<compile_context>
chip_gen: v7x
topology: tpu7x:2x2x1
jax: 0.10.0
libtpu: 0.0.40
codegen_flags: <defaults>
</compile_context>

<pallas_src>
import functools

import jax
import jax.numpy as jnp
from jax.experimental import pallas as pl
from jax.experimental.pallas import tpu as pltpu


LANE = 128
SUBLANE = 8


def round_up(x, m):
    return ((x + m - 1) // m) * m


@functools.lru_cache(maxsize=1)
def vmem_limit_bytes():
    """Per-generation scoped-VMEM cap (v7x: 64 MiB physical, v4/v5e/v6e: 128 MiB)."""
    kind = ""
    try:
        kind = jax.devices()[0].device_kind.lower()
    except Exception:
        pass
    if "v7" in kind:
        return 48 * 1024 * 1024
    if ("v4" in kind) or ("v5" in kind) or ("v6" in kind):
        return 100 * 1024 * 1024
    return None  # unknown part: leave the compiler default


def mosaic_params(dimension_semantics):
    kw = dict(dimension_semantics=dimension_semantics)
    lim = vmem_limit_bytes()
    if lim is not None:
        kw["vmem_limit_bytes"] = lim
    return pltpu.CompilerParams(**kw)


def vmem_budget():
    lim = vmem_limit_bytes()
    return int(0.5 * (lim if lim is not None else 64 * 1024 * 1024))


def choose_row_tile(n_pad):
    """Largest 128-multiple tile <= 512 that still yields >= 2 row tiles
    (the 'parallel' row axis is what feeds both v7x TensorCores)."""
    for t in (512, 256, 128):
        if n_pad % t == 0 and n_pad // t >= 2:
            return t
    return min(n_pad, 512)


def choose_k_tile(n_pad):
    return 512 if n_pad % 512 == 0 else 256


# ---------------------------------------------------------------------------
# Pallas kernels
# ---------------------------------------------------------------------------

def fused_layer_kernel(a_ref, x_ref, w_ref, b_ref, rrow_ref, rcol_ref, o_ref):
    """One GCN layer fused: SiLU( rrow * (A01 @ (rcol * (X@W))) + b ).

    X, W, rcol are VMEM-resident across the row-tile grid; only the A01 row
    stripe streams.  Matmul inputs are bf16, accumulation f32, and the degree
    normalization (rrow/rcol) stays in f32.
    """
    xw = jnp.dot(x_ref[...], w_ref[...], preferred_element_type=jnp.float32)
    xw = (xw * rcol_ref[...]).astype(jnp.bfloat16)
    acc = jnp.dot(a_ref[...], xw, preferred_element_type=jnp.float32)
    h = acc * rrow_ref[...] + b_ref[...]
    o_ref[...] = (h * jax.nn.sigmoid(h)).astype(o_ref.dtype)  # SiLU


def xw_kernel(x_ref, w_ref, rcol_ref, o_ref):
    """Row-tiled feature transform with the D^{-1/2} column scale folded in."""
    xw = jnp.dot(x_ref[...], w_ref[...], preferred_element_type=jnp.float32)
    o_ref[...] = (xw * rcol_ref[...]).astype(o_ref.dtype)


def aggregate_kernel(a_ref, xw_ref, b_ref, rrow_ref, o_ref, acc_ref,
                     *, xw_pinned, tk):
    """Tiled A01 @ (rcol*XW) with f32 accumulator; row scale + bias + SiLU fused."""
    k = pl.program_id(1)

    @pl.when(k == 0)
    def _():
        acc_ref[...] = jnp.zeros_like(acc_ref)

    if xw_pinned:
        start = pl.multiple_of(k * tk, tk)
        xw_blk = xw_ref[pl.ds(start, tk), :]   # XW resident; slice the k chunk
    else:
        xw_blk = xw_ref[...]                   # XW streamed per k tile
    acc_ref[...] += jnp.dot(a_ref[...], xw_blk,
                            preferred_element_type=jnp.float32)

    @pl.when(k == pl.num_programs(1) - 1)
    def _():
        h = acc_ref[...] * rrow_ref[...] + b_ref[...]
        o_ref[...] = (h * jax.nn.sigmoid(h)).astype(o_ref.dtype)  # SiLU


def readout_kernel(p_ref, x_ref, w_ref, b_ref, mask_ref, o_ref, acc_ref):
    """global_mean_pool (tiled P @ X), Linear + ReLU, masked log_softmax."""
    k = pl.program_id(0)

    @pl.when(k == 0)
    def _():
        acc_ref[...] = jnp.zeros_like(acc_ref)

    acc_ref[...] += jnp.dot(p_ref[...], x_ref[...],
                            preferred_element_type=jnp.float32)

    @pl.when(k == pl.num_programs(0) - 1)
    def _():
        logits = jnp.dot(acc_ref[...], w_ref[...],
                         preferred_element_type=jnp.float32) + b_ref[...]
        logits = jnp.maximum(logits, 0.0)          # ReLU (readout MLP)
        logits = logits + mask_ref[...]            # mask padded class lanes
        m = jnp.max(logits, axis=1, keepdims=True)
        lse = m + jnp.log(jnp.sum(jnp.exp(logits - m), axis=1, keepdims=True))
        o_ref[...] = logits - lse


# ---------------------------------------------------------------------------
# Pallas wrappers
# ---------------------------------------------------------------------------

def run_fused_layer(a01, x, w, b, r):
    n_pad = a01.shape[0]
    f_pad = x.shape[1]
    h_pad = w.shape[1]
    tm = choose_row_tile(n_pad)
    return pl.pallas_call(
        fused_layer_kernel,
        out_shape=jax.ShapeDtypeStruct((n_pad, h_pad), jnp.bfloat16),
        grid=(n_pad // tm,),
        in_specs=[
            pl.BlockSpec((tm, n_pad), lambda i: (i, 0)),      # A01 row stripe (bf16)
            pl.BlockSpec((n_pad, f_pad), lambda i: (0, 0)),   # X (bf16, resident)
            pl.BlockSpec((f_pad, h_pad), lambda i: (0, 0)),   # W (bf16, resident)
            pl.BlockSpec((1, h_pad), lambda i: (0, 0)),       # bias (f32)
            pl.BlockSpec((tm, 1), lambda i: (i, 0)),          # rrow = D^-1/2 (f32)
            pl.BlockSpec((n_pad, 1), lambda i: (0, 0)),       # rcol = D^-1/2 (f32)
        ],
        out_specs=pl.BlockSpec((tm, h_pad), lambda i: (i, 0)),
        compiler_params=mosaic_params(("parallel",)),
    )(a01, x, w, b, r, r)


def run_xw(x, w, r):
    n_pad, f_pad = x.shape
    h_pad = w.shape[1]
    tm = choose_row_tile(n_pad)
    return pl.pallas_call(
        xw_kernel,
        out_shape=jax.ShapeDtypeStruct((n_pad, h_pad), jnp.bfloat16),
        grid=(n_pad // tm,),
        in_specs=[
            pl.BlockSpec((tm, f_pad), lambda i: (i, 0)),      # X tile (bf16)
            pl.BlockSpec((f_pad, h_pad), lambda i: (0, 0)),   # W (bf16, resident)
            pl.BlockSpec((tm, 1), lambda i: (i, 0)),          # rcol tile (f32)
        ],
        out_specs=pl.BlockSpec((tm, h_pad), lambda i: (i, 0)),
        compiler_params=mosaic_params(("parallel",)),
    )(x, w, r)


def run_aggregate(a01, xw, b, r, xw_pinned):
    n_pad = a01.shape[0]
    h_pad = xw.shape[1]
    tm = choose_row_tile(n_pad)
    tk = choose_k_tile(n_pad)
    if xw_pinned:
        xw_spec = pl.BlockSpec((n_pad, h_pad), lambda i, k: (0, 0))  # VMEM-resident
    else:
        xw_spec = pl.BlockSpec((tk, h_pad), lambda i, k: (k, 0))     # streamed
    kernel = functools.partial(aggregate_kernel, xw_pinned=xw_pinned, tk=tk)
    return pl.pallas_call(
        kernel,
        out_shape=jax.ShapeDtypeStruct((n_pad, h_pad), jnp.bfloat16),
        grid=(n_pad // tm, n_pad // tk),
        in_specs=[
            pl.BlockSpec((tm, tk), lambda i, k: (i, k)),      # A01 tile (bf16)
            xw_spec,                                          # rcol*XW (bf16)
            pl.BlockSpec((1, h_pad), lambda i, k: (0, 0)),    # bias (f32)
            pl.BlockSpec((tm, 1), lambda i, k: (i, 0)),       # rrow tile (f32)
        ],
        out_specs=pl.BlockSpec((tm, h_pad), lambda i, k: (i, 0)),
        scratch_shapes=[pltpu.VMEM((tm, h_pad), jnp.float32)],
        compiler_params=mosaic_params(("parallel", "arbitrary")),
    )(a01, xw, b, r)


def run_readout(pool_mat, x, w, b, cmask):
    g_pad, n_pad = pool_mat.shape
    h_pad = x.shape[1]
    c_pad = w.shape[1]
    tk = choose_k_tile(n_pad)
    return pl.pallas_call(
        readout_kernel,
        out_shape=jax.ShapeDtypeStruct((g_pad, c_pad), jnp.float32),
        grid=(n_pad // tk,),
        in_specs=[
            pl.BlockSpec((g_pad, tk), lambda k: (0, k)),      # pooling matrix (bf16)
            pl.BlockSpec((tk, h_pad), lambda k: (k, 0)),      # node features (bf16)
            pl.BlockSpec((h_pad, c_pad), lambda k: (0, 0)),   # readout W (f32)
            pl.BlockSpec((1, c_pad), lambda k: (0, 0)),       # readout b (f32)
            pl.BlockSpec((1, c_pad), lambda k: (0, 0)),       # class mask (f32)
        ],
        out_specs=pl.BlockSpec((g_pad, c_pad), lambda k: (0, 0)),
        scratch_shapes=[pltpu.VMEM((g_pad, h_pad), jnp.float32)],
        compiler_params=mosaic_params(("arbitrary",)),
    )(pool_mat, x, w, b, cmask)


# ---------------------------------------------------------------------------
# Glue: graph preprocessing, padding, forward (plain JAX)
# ---------------------------------------------------------------------------

def build_adj_and_norm(edge_index, n):
    """Binary adjacency with self-loops (A+I) and its D^{-1/2} scaling vector."""
    src, dst = edge_index[0], edge_index[1]
    a01 = jnp.zeros((n, n), jnp.float32).at[dst, src].add(1.0)  # sum dup edges
    a01 = a01 + jnp.eye(n, dtype=jnp.float32)                   # self-loops
    deg = a01.sum(axis=1)
    d_inv_sqrt = jnp.where(deg > 0, 1.0 / jnp.sqrt(deg), 0.0)
    return a01, d_inv_sqrt


def build_pool_matrix(batch, num_graphs, n):
    """P[g, i] = 1/|graph g| if node i belongs to graph g (global_mean_pool)."""
    one_hot = (batch[None, :] == jnp.arange(num_graphs)[:, None]).astype(jnp.float32)
    counts = one_hot.sum(axis=1, keepdims=True)
    return one_hot / jnp.maximum(counts, 1.0)


def _pad2(a, rows, cols):
    return jnp.pad(a, ((0, rows - a.shape[0]), (0, cols - a.shape[1])))


def gcn_forward(x, edge_index, batch, params, num_graphs, mode="auto"):
    n, f = x.shape
    h_dim = params["conv"][0][0].shape[1]
    c_dim = params["readout_w"].shape[1]

    # 256-multiple node padding -> large tiles and an even number of row tiles.
    n_pad = max(256, round_up(n, 256))
    f_pad = round_up(f, LANE)
    h_pad = round_up(h_dim, LANE)
    c_pad = round_up(c_dim, LANE)
    g_pad = round_up(num_graphs, SUBLANE)

    # Binary adjacency streams in bf16 exactly; f32 degree normalization is
    # applied inside the kernels via the r (= D^{-1/2}) scale vector.
    a01, r = build_adj_and_norm(edge_index, n)
    a01 = _pad2(a01, n_pad, n_pad).astype(jnp.bfloat16)
    r = jnp.pad(r, (0, n_pad - n)).reshape(n_pad, 1).astype(jnp.float32)
    pool = _pad2(build_pool_matrix(batch, num_graphs, n),
                 g_pad, n_pad).astype(jnp.bfloat16)

    # Path selection against the per-generation VMEM budget.
    tm = choose_row_tile(n_pad)
    tk = choose_k_tile(n_pad)
    budget = vmem_budget()
    fused_bytes = (2 * tm * n_pad * 2 + 2 * n_pad * f_pad * 2
                   + 2 * f_pad * h_pad * 2 + 2 * tm * h_pad * 2
                   + n_pad * max(f_pad, h_pad) * 6 + tm * h_pad * 8)
    xw_pin_bytes = (2 * n_pad * h_pad * 2 + 2 * tm * tk * 2
                    + tm * h_pad * 8)
    if mode == "auto":
        if fused_bytes < budget:
            mode = "fused"
        elif xw_pin_bytes < budget:
            mode = "two_pass_pinned"
        else:
            mode = "two_pass_streamed"

    h = _pad2(x, n_pad, f_pad).astype(jnp.bfloat16)
    for (w, b) in params["conv"]:
        w_p = _pad2(w, h.shape[1], h_pad).astype(jnp.bfloat16)
        b_p = jnp.pad(b, (0, h_pad - b.shape[0])).reshape(1, h_pad).astype(jnp.float32)
        if mode == "fused":
            h = run_fused_layer(a01, h, w_p, b_p, r)
        else:
            xw = run_xw(h, w_p, r)                       # rcol-scaled X@W, bf16
            h = run_aggregate(a01, xw, b_p, r,
                              xw_pinned=(mode == "two_pass_pinned"))
        # dropout: identity in eval mode

    w_r = _pad2(params["readout_w"], h_pad, c_pad).astype(jnp.float32)
    b_r = jnp.pad(params["readout_b"], (0, c_pad - c_dim)).reshape(1, c_pad)
    b_r = b_r.astype(jnp.float32)
    cmask = jnp.where(jnp.arange(c_pad) < c_dim, 0.0, -1e30).astype(
        jnp.float32).reshape(1, c_pad)

    out = run_readout(pool, h, w_r, b_r, cmask)          # (g_pad, c_pad) f32
    return out[:num_graphs, :c_dim]


def gcn_reference(x, edge_index, batch, params, num_graphs):
    """Pure-JAX f32 reference of the same forward pass."""
    n = x.shape[0]
    a01, r = build_adj_and_norm(edge_index, n)
    a_hat = r[:, None] * a01 * r[None, :]
    h = x
    for (w, b) in params["conv"]:
        h = a_hat @ (h @ w) + b
        h = h * jax.nn.sigmoid(h)
    one_hot = (batch[None, :] == jnp.arange(num_graphs)[:, None]).astype(jnp.float32)
    pooled = (one_hot @ h) / jnp.maximum(one_hot.sum(axis=1, keepdims=True), 1.0)
    logits = jnp.maximum(pooled @ params["readout_w"] + params["readout_b"], 0.0)
    return jax.nn.log_softmax(logits, axis=1)


# ---------------------------------------------------------------------------
# Main
# ---------------------------------------------------------------------------

if __name__ == "__main__":
    # 4 graphs x 72 nodes (288 nodes -> padded to 512 -> 2 parallel row tiles),
    # num_features=16, hidden_dim=32, num_classes=8.
    gnn_layers = 2
    num_features = 16
    hidden_dim = 32
    num_classes = 8
    nodes_per_graph = 72
    num_graphs = 4
    n_nodes = nodes_per_graph * num_graphs

    key = jax.random.PRNGKey(0)
    k_x, k_w = jax.random.split(key)

    # Node features
    x = jax.random.normal(k_x, (n_nodes, num_features), dtype=jnp.float32)

    # Ring edges inside each graph (both directions)
    src, dst = [], []
    for g in range(num_graphs):
        base = g * nodes_per_graph
        for i in range(nodes_per_graph):
            j = (i + 1) % nodes_per_graph
            src += [base + i, base + j]
            dst += [base + j, base + i]
    edge_index = jnp.array([src, dst], dtype=jnp.int32)

    # Graph-membership vector (data.batch)
    batch = jnp.repeat(jnp.arange(num_graphs, dtype=jnp.int32), nodes_per_graph)

    # Deterministic parameter init (GCNConv weights (in, out) + bias; readout Linear)
    params = {"conv": []}
    dims = [num_features] + [hidden_dim] * gnn_layers
    for li in range(gnn_layers):
        k_w, kw_i, kb_i = jax.random.split(k_w, 3)
        scale = 1.0 / jnp.sqrt(jnp.float32(dims[li]))
        w = jax.random.normal(kw_i, (dims[li], dims[li + 1]), jnp.float32) * scale
        b = jax.random.normal(kb_i, (dims[li + 1],), jnp.float32) * 0.1
        params["conv"].append((w, b))
    k_w, kw_r, kb_r = jax.random.split(k_w, 3)
    params["readout_w"] = (
        jax.random.normal(kw_r, (hidden_dim, num_classes), jnp.float32)
        / jnp.sqrt(jnp.float32(hidden_dim))
    )
    params["readout_b"] = jax.random.normal(kb_r, (num_classes,), jnp.float32) * 0.1

    ref = gcn_reference(x, edge_index, batch, params, num_graphs)

    # Default (auto -> fused single-pass-per-layer) path.
    out = gcn_forward(x, edge_index, batch, params, num_graphs)
    out = jax.block_until_ready(out)

    assert out.shape == (num_graphs, num_classes)
    assert bool(jnp.all(jnp.isfinite(out)))
    # rows of log_softmax must exponentiate-sum to ~1
    assert bool(jnp.allclose(jnp.exp(out).sum(axis=1), 1.0, atol=1e-4))
    # matches pure-JAX f32 reference (bf16 activation streaming tolerance)
    assert bool(jnp.allclose(out, ref, atol=5e-2, rtol=5e-2))

    # Also exercise the large-graph fallback paths (XW pinned / streamed).
    out_pin = jax.block_until_ready(
        gcn_forward(x, edge_index, batch, params, num_graphs, mode="two_pass_pinned"))
    out_str = jax.block_until_ready(
        gcn_forward(x, edge_index, batch, params, num_graphs, mode="two_pass_streamed"))
    assert bool(jnp.allclose(out_pin, ref, atol=5e-2, rtol=5e-2))
    assert bool(jnp.allclose(out_str, ref, atol=5e-2, rtol=5e-2))

    print("KERNEL_OK")
</pallas_src>

<mosaic_0001>
module attributes {stable_mosaic.version = 11 : i64} {
  func.func @fused_layer_kernel(%arg0: i32, %arg1: memref<256x512xbf16, #tpu.memory_space<vmem>>, %arg2: memref<512x128xbf16, #tpu.memory_space<vmem>>, %arg3: memref<128x128xbf16, #tpu.memory_space<vmem>>, %arg4: memref<1x128xf32, #tpu.memory_space<vmem>>, %arg5: memref<256x1xf32, #tpu.memory_space<vmem>>, %arg6: memref<512x1xf32, #tpu.memory_space<vmem>>, %arg7: memref<256x128xbf16, #tpu.memory_space<vmem>>) attributes {dimension_semantics = [#tpu.dimension_semantics<parallel>], iteration_bounds = array<i64: 2>, scalar_prefetch = 0 : i64, scratch_operands = 0 : i64, tpu.core_type = #tpu.core_type<tc>, window_params = [{transform_indices = @transform_0, window_bounds = array<i64: 256, 512>}, {pipeline_mode = #tpu.pipeline_mode<synchronous>, transform_indices = @transform_1, window_bounds = array<i64: 512, 128>}, {pipeline_mode = #tpu.pipeline_mode<synchronous>, transform_indices = @transform_2, window_bounds = array<i64: 128, 128>}, {pipeline_mode = #tpu.pipeline_mode<synchronous>, transform_indices = @transform_3, window_bounds = array<i64: 1, 128>}, {transform_indices = @transform_4, window_bounds = array<i64: 256, 1>}, {pipeline_mode = #tpu.pipeline_mode<synchronous>, transform_indices = @transform_5, window_bounds = array<i64: 512, 1>}, {transform_indices = @transform_6, window_bounds = array<i64: 256, 128>}]} {
    %c0 = arith.constant 0 : index
    %c0_0 = arith.constant 0 : index
    %0 = vector.load %arg2[%c0, %c0_0] : memref<512x128xbf16, #tpu.memory_space<vmem>>, vector<512x128xbf16>
    %c0_1 = arith.constant 0 : index
    %c0_2 = arith.constant 0 : index
    %1 = vector.load %arg3[%c0_1, %c0_2] : memref<128x128xbf16, #tpu.memory_space<vmem>>, vector<128x128xbf16>
    %cst = arith.constant dense<0.000000e+00> : vector<512x128xf32>
    %2 = tpu.matmul %0, %1, %cst {dimension_numbers = #tpu.dot_dimension_numbers<[1], [0], [0], [1], [0, 0, 1, 1], [], []>} : vector<512x128xbf16>, vector<128x128xbf16>, vector<512x128xf32> -> vector<512x128xf32>
    %c0_3 = arith.constant 0 : index
    %c0_4 = arith.constant 0 : index
    %3 = vector.load %arg6[%c0_3, %c0_4] : memref<512x1xf32, #tpu.memory_space<vmem>>, vector<512x1xf32>
    %4 = vector.broadcast %3 : vector<512x1xf32> to vector<512x128xf32>
    %5 = arith.mulf %2, %4 : vector<512x128xf32>
    %6 = arith.truncf %5 : vector<512x128xf32> to vector<512x128xbf16>
    %c0_5 = arith.constant 0 : index
    %c0_6 = arith.constant 0 : index
    %7 = vector.load %arg1[%c0_5, %c0_6] : memref<256x512xbf16, #tpu.memory_space<vmem>>, vector<256x512xbf16>
    %cst_7 = arith.constant dense<0.000000e+00> : vector<256x128xf32>
    %8 = tpu.matmul %7, %6, %cst_7 {dimension_numbers = #tpu.dot_dimension_numbers<[1], [0], [0], [1], [0, 0, 1, 1], [], []>} : vector<256x512xbf16>, vector<512x128xbf16>, vector<256x128xf32> -> vector<256x128xf32>
    %c0_8 = arith.constant 0 : index
    %c0_9 = arith.constant 0 : index
    %9 = vector.load %arg5[%c0_8, %c0_9] : memref<256x1xf32, #tpu.memory_space<vmem>>, vector<256x1xf32>
    %10 = vector.broadcast %9 : vector<256x1xf32> to vector<256x128xf32>
    %11 = arith.mulf %8, %10 : vector<256x128xf32>
    %c0_10 = arith.constant 0 : index
    %c0_11 = arith.constant 0 : index
    %12 = vector.load %arg4[%c0_10, %c0_11] : memref<1x128xf32, #tpu.memory_space<vmem>>, vector<1x128xf32>
    %13 = vector.broadcast %12 : vector<1x128xf32> to vector<256x128xf32>
    %14 = arith.addf %11, %13 : vector<256x128xf32>
    %15 = arith.negf %14 : vector<256x128xf32>
    %16 = math.exp %15 : vector<256x128xf32>
    %cst_12 = arith.constant 1.000000e+00 : f32
    %17 = vector.broadcast %cst_12 : f32 to vector<256x128xf32>
    %18 = arith.addf %17, %16 : vector<256x128xf32>
    %19 = arith.divf %17, %18 : vector<256x128xf32>
    %20 = arith.mulf %14, %19 : vector<256x128xf32>
    %21 = arith.truncf %20 : vector<256x128xf32> to vector<256x128xbf16>
    %c0_13 = arith.constant 0 : index
    %c0_14 = arith.constant 0 : index
    %22 = vector.load %arg7[%c0_13, %c0_14] : memref<256x128xbf16, #tpu.memory_space<vmem>>, vector<256x128xbf16>
    tpu.vector_store %arg7[%c0_13, %c0_14], %21 {strides = array<i32>} : memref<256x128xbf16, #tpu.memory_space<vmem>>, vector<256x128xbf16>,
    return
  }
  func.func @transform_0(%arg0: i32) -> (i32, i32) {
    %c0_i32 = arith.constant 0 : i32
    %c0_i32_0 = arith.constant 0 : i32
    return %arg0, %c0_i32 : i32, i32
  }
  func.func @transform_1(%arg0: i32) -> (i32, i32) {
    %c0_i32 = arith.constant 0 : i32
    %c0_i32_0 = arith.constant 0 : i32
    %c0_i32_1 = arith.constant 0 : i32
    return %c0_i32, %c0_i32_0 : i32, i32
  }
  func.func @transform_2(%arg0: i32) -> (i32, i32) {
    %c0_i32 = arith.constant 0 : i32
    %c0_i32_0 = arith.constant 0 : i32
    %c0_i32_1 = arith.constant 0 : i32
    return %c0_i32, %c0_i32_0 : i32, i32
  }
  func.func @transform_3(%arg0: i32) -> (i32, i32) {
    %c0_i32 = arith.constant 0 : i32
    %c0_i32_0 = arith.constant 0 : i32
    %c0_i32_1 = arith.constant 0 : i32
    return %c0_i32, %c0_i32_0 : i32, i32
  }
  func.func @transform_4(%arg0: i32) -> (i32, i32) {
    %c0_i32 = arith.constant 0 : i32
    %c0_i32_0 = arith.constant 0 : i32
    return %arg0, %c0_i32 : i32, i32
  }
  func.func @transform_5(%arg0: i32) -> (i32, i32) {
    %c0_i32 = arith.constant 0 : i32
    %c0_i32_0 = arith.constant 0 : i32
    %c0_i32_1 = arith.constant 0 : i32
    return %c0_i32, %c0_i32_0 : i32, i32
  }
  func.func @transform_6(%arg0: i32) -> (i32, i32) {
    %c0_i32 = arith.constant 0 : i32
    %c0_i32_0 = arith.constant 0 : i32
    return %arg0, %c0_i32 : i32, i32
  }
}

</mosaic_0001>

<bundles_post_ra>
// kernel: tpu_custom_call.1
= control target key start
LH: loop header
LB: loop body
LE: loop exit
PB: predicated region body
PF: predicated region fallthrough
CT: control target
= control target key end

     0   :  { %11 = vsyncpa [#allocation3], 0  ;;  %s5012_s0 = inlined_call_operand.vmem [shape: bf16[512,512], index: 0, kind: input, shape index: {}]   ;;  %s5013_s1 = inlined_call_operand.hbm [shape: bf16[512,128], index: 1, kind: input, shape index: {}]   ;;  %s5014_s2 = inlined_call_operand.hbm [shape: bf16[128,128], index: 2, kind: input, shape index: {}]   ;;  %s5015_s3 = inlined_call_operand.vmem [shape: f32[1,128], index: 3, kind: input, shape index: {}]   ;;  %s5016_s4 = inlined_call_operand.vmem [shape: f32[512,1], index: 4, kind: input, shape index: {}]   ;;  %s5017_s5 = inlined_call_operand.vmem [shape: f32[512,1], index: 5, kind: input, shape index: {}]   ;;  %s5018_s6 = inlined_call_operand.hbm [shape: bf16[512,128], index: 6, kind: output, shape index: {}]  }
   0x1   :  { %12 = vsyncpa [#allocation6], 0 }
   0x2   :  { %13 = vsyncpa [#allocation4], 0 }
   0x3   :  { %15 = vsyncpa [#allocation4 + $0x1], 0  ;;  %s4041_s21 = smov 0   ;;  %s4043_s22 = smov 0  }
   0x4   :  { %s4045_s23 = smov 0   ;;  %s4047_s24 = smov 0  }
   0x5 LB: > { %s4062_s25 = sadd.s32 4294967295, %s3996_s24   ;;  %s2861_s26 = sadd.s32 4294967294, %s3996_s24   ;;  %s3996_s24 = sphi %s4047_s24, %s5099_s24   ;;  %s3992_s23 = sphi %s4045_s23, %s5098_s23   ;;  %s3988_s22 = sphi %s4043_s22, %s5097_s22   ;;  %s3984_s21 = sphi %s4041_s21, %s5096_s21  }
   0x6   : > { %s4066_s27 = sadd.s32 1, %s3996_s24   ;;  %s164_s28 = sadd.s32 1, %s3992_s23 }
   0x7   : > { %s161_s29 = ssub.s32 %s3996_s24, %s4066_s27  ;;  %p174_p0 = scmp.ne.s32.totalorder %s3992_s23, %s3988_s22 }
   0x8   : > { %p162_p1 = scmp.eq.s32.totalorder %s161_s29, 0  ;;  %p175_p2 = scmp.eq.s32.totalorder %s4062_s25, 1 }
   0x9   : > { %p180_p3 = scmp.ne.s32.totalorder %s3988_s22, %s3984_s21  ;;  %p181_p4 = scmp.eq.s32.totalorder %s2861_s26, 1 }
   0xa   : > { %s4077_s30 = scalar_select %p162_p1, %s3992_s23, %s164_s28  }
   0xb   : > { %p4079_p5 = por %p175_p2, %p174_p0  ;;  %p4083_p6 = por %p181_p4, %p180_p3 }
   0xc   : > { %p2862_p7 = scmp.ge.s32.totalorder %s3996_s24, 1  ;;  %p188_p8 = scmp.lt.s32.totalorder %s3996_s24, 3 }
   0xd   : > { %s5031_s7 = scalar_select %p4079_p5, 1, 0 }
   0xe   : > { %s5032_s8 = scalar_select %p4083_p6, 1, 0 }
   0xf   : > { %p5019_p9 = scmp.eq.s32.totalorder %s4062_s25, 0  ;;  %p4090_p10 = pnand %p2862_p7, %p188_p8 }
  0x10   : > { %s3998_s10 = smov [#allocation2]   ;;  %s3999_s13 = smov [#allocation5]  }
  0x11   : > { %s5033_s9 = scalar_select %p4090_p10, 1, 0 }
  0x12   : > { %s200_s11 = sshll.u32 %s3998_s10, 4  ;;  %p3548_p11 = pneg %p4090_p10  ;;  %s201_s11 = int_to_ptr.vmem [resolvable:$true] %s200_s11 }
  0x13   : > { %s213_s14 = sshll.u32 %s3999_s13, 4  ;;  %s3870_s17 = scalar_lea.hbm %s5013_s1, 4096  ;;  %s4102_s14 = int_to_ptr.vmem [resolvable:$true] %s213_s14 }
  0x14   : > { %p4098_p12 = pnand %p5019_p9, %p3548_p11  ;;  %p3871_p13 = scmp.ne.s32.totalorder %s5013_s1, %s3870_s17 }
  0x15   : > { %p3877_p3 = scmp.lt.u32.totalorder %s3870_s17, %s5013_s1 }
  0x16   : > { %p3872_p0 = pneg %p4098_p12 }
  0x18   : > { %p3873_p1 = pnand %p3872_p0, %p3871_p13 }
  0x1a   : > { %p3874_p2 = pneg %p3873_p1 }
  0x1c   : > { %p3879_p4 = pnand %p3877_p3, %p3874_p2 }
  0x1e   : > { %3882 = shalt.err (!%p3879_p4)
}
  0x1f   : > { %s3883_s28 = scalar_lea.vmem %s201_s11, 4096  ;;  %p3891_p9 = scmp.lt.s32.totalorder %s201_s11, %s201_s11 }
  0x20   : > { %p3884_p7 = scmp.ne.s32.totalorder %s201_s11, %s3883_s28  ;;  %p3892_p6 = scmp.lt.s32.totalorder %s3883_s28, %s3883_s28 }
  0x22   : > { %p3886_p8 = pnand %p3884_p7, %p3872_p0  ;;  %p3893_p5 = por %p3892_p6, %p3891_p9 }
  0x24   : > { %p3887_p11 = pneg %p3886_p8 }
  0x26   : > { %p3894_p10 = pnand %p3893_p5, %p3887_p11 }
  0x28   : > { %3897 = shalt.err (!%p3894_p10)
}
  0x29   : > { %s4000_s29 = smov 64   ;;  %s4001_s10 = smov 4  }
  0x2a   : > { %3551 = dma.hbm_to_vmem [thread:$0]  (!%p4098_p12), %s5013_s1, 4096, %s201_s11, [#allocation3], %s4000_s29, %s4000_s29, %s4001_s10  }
  0x2b   : > { %s3898_s18 = scalar_lea.hbm %s5014_s2, 1024 }
  0x2c   : > { %p3899_p13 = scmp.ne.s32.totalorder %s5014_s2, %s3898_s18  ;;  %p3905_p9 = scmp.lt.u32.totalorder %s3898_s18, %s5014_s2 }
  0x2e   : > { %p3901_p5 = pnand %p3899_p13, %p3872_p0 }
  0x30   : > { %p3902_p6 = pneg %p3901_p5 }
  0x32   : > { %p3907_p10 = pnand %p3905_p9, %p3902_p6 }
  0x34   : > { %3910 = shalt.err (!%p3907_p10)
}
  0x35   : > { %s3911_s11 = scalar_lea.vmem %s4102_s14, 1024  ;;  %p3919_p4 = scmp.lt.s32.totalorder %s4102_s14, %s4102_s14 }
  0x36   : > { %p3912_p1 = scmp.ne.s32.totalorder %s4102_s14, %s3911_s11  ;;  %p3920_p7 = scmp.lt.s32.totalorder %s3911_s11, %s3911_s11 }
  0x38   : > { %p3914_p2 = pnand %p3912_p1, %p3872_p0  ;;  %p3921_p8 = por %p3920_p7, %p3919_p4 }
  0x3a   : > { %p3915_p3 = pneg %p3914_p2 }
  0x3c   : > { %p3922_p11 = pnand %p3921_p8, %p3915_p3 }
  0x3e   : > { %3925 = shalt.err (!%p3922_p11)
}
  0x3f   : > { %3554 = dma.hbm_to_vmem [thread:$0]  (!%p4098_p12), %s5014_s2, 1024, %s4102_s14, [#allocation6], %s4000_s29, %s4000_s29, %s4001_s10  }
  0x40   : > { %p5035_p13 = scmp.ne.s32.totalorder %s5033_s9, 0 }
  0x42   : > { %254 = sbr.rel (%p5035_p13) target bundleno = 788 (0x314), region = 44 }
  0x49   : > { %p5036_p5 = scmp.eq.s32.totalorder %s4062_s25, 0 }
  0x4b   : > { %3971 = dma.done.wait (%p5036_p5), [#allocation3], 4096   ;;  %p5037_p0 = pmov %p5036_p5 }
  0x4d   : > { %3973 = vsyncadd (%p5037_p0), [#allocation3], 4294963200  ;;  %p5038_p6 = pmov %p5037_p0 }
  0x4e   : > { %p5039_p9 = pmov %p5037_p0 }
  0x4f   : > { %3975 = dma.done.wait (%p5038_p6), [#allocation6], 1024  }
  0x50   : > { %3977 = vsyncadd (%p5039_p9), [#allocation6], 4294966272  ;;  %v4002_v0 = vmov 0   ;;  %v966_v1 = vld [vmem:[%s5017_s5 + $0x180] sm:$0xff]  ;;  %v967_v4 = vld [vmem:[%s5017_s5 + $0x188] sm:$0xff]  ;;  %s2870_s10 = sshll.u32 %s4062_s25, 5 }
  0x51   : > { %3604 = vset.pattern.permute.xlu1 %v4002_v0  ;;  %3603 = vset.pattern.permute.xlu0 %v4002_v0  ;;  %v934_v2 = vld [vmem:[%s5017_s5 + $0x80] sm:$0xff]  ;;  %v935_v5 = vld [vmem:[%s5017_s5 + $0x88] sm:$0xff]  ;;  %v3607_v9 = vld [vmem:[#allocation5 + $0x10] sm:$0xff]   ;;  %p295_p12 = scmp.lt.s32.totalorder %s2870_s10, 63  ;;  %p5094_p1 = scmp.ne.s32.totalorder %s5031_s7, 0 }
  0x52   : > { %1224 = vperm.xlu1 %3604, %v966_v1   ;;  %1064 = vperm.xlu0 %3603, %v934_v2   ;;  %v3605_v3 = vld [vmem:[#allocation5] sm:$0xff]   ;;  %v3606_v6 = vld [vmem:[#allocation5 + $0x8] sm:$0xff]   ;;  %v3608_v12 = vld [vmem:[#allocation5 + $0x18] sm:$0xff]   ;;  %s4003_s20 = smov [#allocation7]  }
  0x53   : > { %3442 = vmatprep.subr.bf16.mxu0 %v3605_v3  ;;  %3522 = vmatprep.subr.bf16.mxu1 %v3605_v3  ;;  %v919_v7 = vld [vmem:[%s5017_s5 + $0x8] sm:$0xff]  ;;  %v918_v8 = vld [vmem:[%s5017_s5] sm:$0xff]  ;;  %v937_v13 = vld [vmem:[%s5017_s5 + $0x98] sm:$0xff]  ;;  %s5101_s10 = smov (!%p295_p12, %s2870_s10), 63 }
  0x54   : > { %3443 = vmatpush3.bf16.msra.mxu0 %v3605_v3  ;;  %3530 = vmatpush3.bf16.msra.mxu1 %v3605_v3  ;;  %v951_v10 = vld [vmem:[%s5017_s5 + $0x108] sm:$0xff]  ;;  %v950_v11 = vld [vmem:[%s5017_s5 + $0x100] sm:$0xff]  ;;  %v936_v14 = vld [vmem:[%s5017_s5 + $0x90] sm:$0xff]  ;;  %s3049_s13 = sshll.u32 %s5101_s10, 4  ;;  %s2874_s14 = sshll.u32 %s5101_s10, 3 }
  0x55   : > { %3444 = vmatprep.subr.bf16.mxu0 %v3606_v6  ;;  %3523 = vmatprep.subr.bf16.mxu1 %v3606_v6  ;;  %v3609_v15 = vld [vmem:[#allocation5 + $0x20] sm:$0xff]   ;;  %v969_v18 = vld [vmem:[%s5017_s5 + $0x198] sm:$0xff]  ;;  %v968_v19 = vld [vmem:[%s5017_s5 + $0x190] sm:$0xff]  ;;  %s4282_s17 = scalar_lea.vmem %s5012_s0, %s3049_s13  ;;  %s4366_s26 = scalar_lea.vmem %s5016_s4, %s2874_s14 }
  0x56   : > { %1229 = vperm.xlu1 %3604, %v967_v4   ;;  %1069 = vperm.xlu0 %3603, %v935_v5   ;;  %v3613_v16 = vld [vmem:[#allocation2] sm:$0xff]   ;;  %v3610_v20 = vld [vmem:[#allocation5 + $0x28] sm:$0xff]   ;;  %v921_v21 = vld [vmem:[%s5017_s5 + $0x18] sm:$0xff]  ;;  %s3082_s14 = sshll.u32 %s4062_s25, 11 }
  0x57   : > { %v3614_v17 = vld [vmem:[#allocation2 + $0x80] sm:$0xff]   ;;  %3458 = vmatprep.mubr.bf16.mxu0 %v3613_v16  ;;  %v920_v22 = vld [vmem:[%s5017_s5 + $0x10] sm:$0xff]  ;;  %v953_v24 = vld [vmem:[%s5017_s5 + $0x118] sm:$0xff]  ;;  %s4964_s18 = scalar_lea.hbm %s5018_s6, %s3082_s14 }
  0x58   : > { %3445 = vmatpush3.bf16.msra.mxu0 %v3606_v6  ;;  %3531 = vmatpush3.bf16.msra.mxu1 %v3606_v6  ;;  %v3611_v23 = vld [vmem:[#allocation5 + $0x30] sm:$0xff]   ;;  %v3612_v26 = vld [vmem:[#allocation5 + $0x38] sm:$0xff]   ;;  %v939_v27 = vld [vmem:[%s5017_s5 + $0xa8] sm:$0xff] }
  0x59   : > { %3446 = vmatprep.subr.bf16.mxu0 %v3607_v9  ;;  %3524 = vmatprep.subr.bf16.mxu1 %v3607_v9  ;;  %v952_v25 = vld [vmem:[%s5017_s5 + $0x110] sm:$0xff]  ;;  %v938_v28 = vld [vmem:[%s5017_s5 + $0xa0] sm:$0xff]  ;;  %v3615_v29 = vld [vmem:[#allocation2 + $0x8] sm:$0xff]  }
  0x5a   : > { %989 = vperm.xlu1 %3604, %v919_v7   ;;  %984 = vperm.xlu0 %3603, %v918_v8   ;;  %v3616_v30 = vld [vmem:[#allocation2 + $0x88] sm:$0xff]   ;;  %v3617_v31 = vld [vmem:[#allocation2 + $0x10] sm:$0xff]   ;;  %v970_v34 = vld [vmem:[%s5017_s5 + $0x1a0] sm:$0xff] }
  0x5b   : > { %3490 = vmatprep.mubr.bf16.mxu1 %v3614_v17  ;;  %v3618_v32 = vld [vmem:[#allocation2 + $0x90] sm:$0xff]   ;;  %v971_v33 = vld [vmem:[%s5017_s5 + $0x1a8] sm:$0xff]  ;;  %v922_v36 = vld [vmem:[%s5017_s5 + $0x20] sm:$0xff] }
  0x5c   : > { %3447 = vmatpush3.bf16.msra.mxu0 %v3607_v9  ;;  %3532 = vmatpush3.bf16.msra.mxu1 %v3607_v9  ;;  %v923_v35 = vld [vmem:[%s5017_s5 + $0x28] sm:$0xff]  ;;  %v3619_v37 = vld [vmem:[#allocation2 + $0x18] sm:$0xff]   ;;  %v3621_v39 = vld [vmem:[#allocation2 + $0x20] sm:$0xff]  }
  0x5d   : > { %3448 = vmatprep.subr.bf16.mxu0 %v3608_v12  ;;  %3525 = vmatprep.subr.bf16.mxu1 %v3608_v12  ;;  %v3620_v38 = vld [vmem:[#allocation2 + $0x98] sm:$0xff]   ;;  %v3622_v40 = vld [vmem:[#allocation2 + $0xa0] sm:$0xff]   ;;  %v955_v41 = vld [vmem:[%s5017_s5 + $0x128] sm:$0xff] }
  0x5e   : > { %1149 = vperm.xlu1 %3604, %v951_v10   ;;  %1144 = vperm.xlu0 %3603, %v950_v11   ;;  %v954_v42 = vld [vmem:[%s5017_s5 + $0x120] sm:$0xff]  ;;  %v941_v43 = vld [vmem:[%s5017_s5 + $0xb8] sm:$0xff]  ;;  %v940_v44 = vld [vmem:[%s5017_s5 + $0xb0] sm:$0xff] }
  0x5f   : > { %v3623_v45 = vld [vmem:[#allocation2 + $0x28] sm:$0xff]   ;;  %v3625_v47 = vld [vmem:[#allocation2 + $0x30] sm:$0xff]   ;;  %v973_v49 = vld [vmem:[%s5017_s5 + $0x1b8] sm:$0xff] }
  0x60   : > { %3449 = vmatpush3.bf16.msra.mxu0 %v3608_v12  ;;  %3533 = vmatpush3.bf16.msra.mxu1 %v3608_v12  ;;  %v3624_v46 = vld [vmem:[#allocation2 + $0xa8] sm:$0xff]   ;;  %v3626_v48 = vld [vmem:[#allocation2 + $0xb0] sm:$0xff]   ;;  %v925_v51 = vld [vmem:[%s5017_s5 + $0x38] sm:$0xff] }
  0x61   : > { %3450 = vmatprep.subr.bf16.mxu0 %v3609_v15  ;;  %3526 = vmatprep.subr.bf16.mxu1 %v3609_v15  ;;  %v972_v50 = vld [vmem:[%s5017_s5 + $0x1b0] sm:$0xff]  ;;  %v3627_v53 = vld [vmem:[#allocation2 + $0x38] sm:$0xff]   ;;  %v3629_v55 = vld [vmem:[#allocation2 + $0x40] sm:$0xff]  }
  0x62   : > { %1079 = vperm.xlu1 %3604, %v937_v13   ;;  %1074 = vperm.xlu0 %3603, %v936_v14   ;;  %v924_v52 = vld [vmem:[%s5017_s5 + $0x30] sm:$0xff]  ;;  %v3628_v54 = vld [vmem:[#allocation2 + $0xb8] sm:$0xff]   ;;  %v3630_v56 = vld [vmem:[#allocation2 + $0xc0] sm:$0xff]  }
  0x63   : > { %v957_v57 = vld [vmem:[%s5017_s5 + $0x138] sm:$0xff]  ;;  %v956_v58 = vld [vmem:[%s5017_s5 + $0x130] sm:$0xff]  ;;  %v943_v59 = vld [vmem:[%s5017_s5 + $0xc8] sm:$0xff] }
  0x64   : > { %3451 = vmatpush3.bf16.msra.mxu0 %v3609_v15  ;;  %3534 = vmatpush3.bf16.msra.mxu1 %v3609_v15  ;;  %v942_v60 = vld [vmem:[%s5017_s5 + $0xc0] sm:$0xff]  ;;  %v3631_v61 = vld [vmem:[#allocation2 + $0x48] sm:$0xff]   ;;  %v3633_v63 = vld [vmem:[#allocation2 + $0x50] sm:$0xff]  }
  0x65   : > { %3452 = vmatprep.subr.bf16.mxu0 %v3610_v20  ;;  %3527 = vmatprep.subr.bf16.mxu1 %v3610_v20  ;;  %v3632_v62 = vld [vmem:[#allocation2 + $0xc8] sm:$0xff]   ;;  %v3634_v0 = vld [vmem:[#allocation2 + $0xd0] sm:$0xff]   ;;  %v974_v2 = vld [vmem:[%s5017_s5 + $0x1c0] sm:$0xff] }
  0x66   : > { %1239 = vperm.xlu1 %3604, %v969_v18   ;;  %1234 = vperm.xlu0 %3603, %v968_v19   ;;  %v975_v1 = vld [vmem:[%s5017_s5 + $0x1c8] sm:$0xff]  ;;  %v926_v4 = vld [vmem:[%s5017_s5 + $0x40] sm:$0xff]  ;;  %v3635_v5 = vld [vmem:[#allocation2 + $0x58] sm:$0xff]  }
  0x67   : > { %v927_v3 = vld [vmem:[%s5017_s5 + $0x48] sm:$0xff]  ;;  %v3636_v6 = vld [vmem:[#allocation2 + $0xd8] sm:$0xff]   ;;  %v3637_v7 = vld [vmem:[#allocation2 + $0x60] sm:$0xff]  }
  0x68   : > { %3453 = vmatpush3.bf16.msra.mxu0 %v3610_v20  ;;  %3535 = vmatpush3.bf16.msra.mxu1 %v3610_v20  ;;  %v3638_v8 = vld [vmem:[#allocation2 + $0xe0] sm:$0xff]   ;;  %v959_v9 = vld [vmem:[%s5017_s5 + $0x148] sm:$0xff]  ;;  %v945_v11 = vld [vmem:[%s5017_s5 + $0xd8] sm:$0xff] }
  0x69   : > { %3454 = vmatprep.subr.bf16.mxu0 %v3611_v23  ;;  %3528 = vmatprep.subr.bf16.mxu1 %v3611_v23  ;;  %v958_v10 = vld [vmem:[%s5017_s5 + $0x140] sm:$0xff]  ;;  %v944_v12 = vld [vmem:[%s5017_s5 + $0xd0] sm:$0xff]  ;;  %v3639_v13 = vld [vmem:[#allocation2 + $0x68] sm:$0xff]  }
  0x6a   : > { %999 = vperm.xlu1 %3604, %v921_v21   ;;  %994 = vperm.xlu0 %3603, %v920_v22   ;;  %v3640_v14 = vld [vmem:[#allocation2 + $0xe8] sm:$0xff]   ;;  %v3641_v15 = vld [vmem:[#allocation2 + $0x70] sm:$0xff]   ;;  %v977_v17 = vld [vmem:[%s5017_s5 + $0x1d8] sm:$0xff] }
  0x6b   : > { %v3642_v16 = vld [vmem:[#allocation2 + $0xf0] sm:$0xff]   ;;  %v929_v19 = vld [vmem:[%s5017_s5 + $0x58] sm:$0xff] }
  0x6c   : > { %3455 = vmatpush3.bf16.msra.mxu0 %v3611_v23  ;;  %3536 = vmatpush3.bf16.msra.mxu1 %v3611_v23  ;;  %v976_v18 = vld [vmem:[%s5017_s5 + $0x1d0] sm:$0xff]  ;;  %v3643_v21 = vld [vmem:[#allocation2 + $0x78] sm:$0xff]  }
  0x6d   : > { %3456 = vmatprep.subr.bf16.mxu0 %v3612_v26  ;;  %3529 = vmatprep.subr.bf16.mxu1 %v3612_v26  ;;  %v928_v20 = vld [vmem:[%s5017_s5 + $0x50] sm:$0xff]  ;;  %v3644_v22 = vld [vmem:[#allocation2 + $0xf8] sm:$0xff]  }
  0x6e   : > { %1159 = vperm.xlu1 %3604, %v953_v24   ;;  %1154 = vperm.xlu0 %3603, %v952_v25   ;;  %v961_v23 = vld [vmem:[%s5017_s5 + $0x158] sm:$0xff]  ;;  %v960_v24 = vld [vmem:[%s5017_s5 + $0x150] sm:$0xff]  ;;  %v947_v25 = vld [vmem:[%s5017_s5 + $0xe8] sm:$0xff] }
  0x70   : > { %3457 = vmatpush3.bf16.msra.mxu0 %v3612_v26  ;;  %3537 = vmatpush3.bf16.msra.mxu1 %v3612_v26  ;;  %v946_v26 = vld [vmem:[%s5017_s5 + $0xe0] sm:$0xff] }
  0x72   : > { %1089 = vperm.xlu1 %3604, %v939_v27   ;;  %1084 = vperm.xlu0 %3603, %v938_v28   ;;  %v979_v27 = vld [vmem:[%s5017_s5 + $0x1e8] sm:$0xff]  ;;  %v978_v28 = vld [vmem:[%s5017_s5 + $0x1e0] sm:$0xff] }
  0x73   : > { %3459 = vmatmul.mubr.bf16.vlgmr.msra.gmra.mrb[0].mxu0 %v3615_v29  ;;  %3491 = vmatmul.mubr.bf16.vlgmr.msra.gmra.mrb[0].mxu1 %v3616_v30  ;;  %v931_v29 = vld [vmem:[%s5017_s5 + $0x68] sm:$0xff]  ;;  %v930_v30 = vld [vmem:[%s5017_s5 + $0x60] sm:$0xff] }
  0x74   : > { %3462 = vmatprep.mubr.bf16.mxu0 %v3617_v31  ;;  %3494 = vmatprep.mubr.bf16.mxu1 %v3618_v32  ;;  %v963_v31 = vld [vmem:[%s5017_s5 + $0x168] sm:$0xff]  ;;  %v962_v32 = vld [vmem:[%s5017_s5 + $0x160] sm:$0xff] }
  0x76   : > { %1249 = vperm.xlu1 %3604, %v971_v33   ;;  %1244 = vperm.xlu0 %3603, %v970_v34   ;;  %v949_v33 = vld [vmem:[%s5017_s5 + $0xf8] sm:$0xff]  ;;  %v948_v34 = vld [vmem:[%s5017_s5 + $0xf0] sm:$0xff] }
  0x7a   : > { %1009 = vperm.xlu1 %3604, %v923_v35   ;;  %1004 = vperm.xlu0 %3603, %v922_v36   ;;  %v981_v35 = vld [vmem:[%s5017_s5 + $0x1f8] sm:$0xff]  ;;  %v980_v36 = vld [vmem:[%s5017_s5 + $0x1f0] sm:$0xff] }
  0x7b   : > { %3463 = vmatmul.mubr.bf16.gmra.mrb[4].mxu0 %v3619_v37  ;;  %3495 = vmatmul.mubr.bf16.gmra.mrb[4].mxu1 %v3620_v38  ;;  %v933_v37 = vld [vmem:[%s5017_s5 + $0x78] sm:$0xff]  ;;  %v932_v38 = vld [vmem:[%s5017_s5 + $0x70] sm:$0xff] }
  0x7c   : > { %3466 = vmatprep.mubr.bf16.mxu0 %v3621_v39  ;;  %3498 = vmatprep.mubr.bf16.mxu1 %v3622_v40  ;;  %v965_v39 = vld [vmem:[%s5017_s5 + $0x178] sm:$0xff]  ;;  %v964_v40 = vld [vmem:[%s5017_s5 + $0x170] sm:$0xff] }
  0x7e   : > { %1169 = vperm.xlu1 %3604, %v955_v41   ;;  %1164 = vperm.xlu0 %3603, %v954_v42   ;;  %v2105_v41 = vld [vmem:[%s4366_s26 + $0x8] sm:$0xff]  ;;  %v2104_v42 = vld [vmem:[%s4366_s26] sm:$0xff] }
  0x82   : > { %1099 = vperm.xlu1 %3604, %v941_v43   ;;  %1094 = vperm.xlu0 %3603, %v940_v44  }
  0x83   : > { %3467 = vmatmul.mubr.bf16.gmra.mrb[8].mxu0 %v3623_v45  ;;  %3499 = vmatmul.mubr.bf16.gmra.mrb[8].mxu1 %v3624_v46  ;;  %v2107_v45 = vld [vmem:[%s4366_s26 + $0x18] sm:$0xff]  ;;  %v2106_v46 = vld [vmem:[%s4366_s26 + $0x10] sm:$0xff] }
  0x84   : > { %3470 = vmatprep.mubr.bf16.mxu0 %v3625_v47  ;;  %3502 = vmatprep.mubr.bf16.mxu1 %v3626_v48 }
  0x86   : > { %1259 = vperm.xlu1 %3604, %v973_v49   ;;  %1254 = vperm.xlu0 %3603, %v972_v50   ;;  %v2109_v49 = vld [vmem:[%s4366_s26 + $0x28] sm:$0xff]  ;;  %v2108_v50 = vld [vmem:[%s4366_s26 + $0x20] sm:$0xff] }
  0x8a   : > { %1019 = vperm.xlu1 %3604, %v925_v51   ;;  %1014 = vperm.xlu0 %3603, %v924_v52  }
  0x8b   : > { %3471 = vmatmul.mubr.bf16.gmra.mrb[12].mxu0 %v3627_v53  ;;  %3503 = vmatmul.mubr.bf16.gmra.mrb[12].mxu1 %v3628_v54  ;;  %v2111_v53 = vld [vmem:[%s4366_s26 + $0x38] sm:$0xff]  ;;  %v2110_v54 = vld [vmem:[%s4366_s26 + $0x30] sm:$0xff] }
  0x8c   : > { %3474 = vmatprep.mubr.bf16.mxu0 %v3629_v55  ;;  %3506 = vmatprep.mubr.bf16.mxu1 %v3630_v56 }
  0x8e   : > { %1179 = vperm.xlu1 %3604, %v957_v57   ;;  %1174 = vperm.xlu0 %3603, %v956_v58   ;;  %v2113_v57 = vld [vmem:[%s4366_s26 + $0x48] sm:$0xff]  ;;  %v2112_v58 = vld [vmem:[%s4366_s26 + $0x40] sm:$0xff] }
  0x92   : > { %1109 = vperm.xlu1 %3604, %v943_v59   ;;  %1104 = vperm.xlu0 %3603, %v942_v60  }
  0x93   : > { %3475 = vmatmul.mubr.bf16.gmra.mrb[16].mxu0 %v3631_v61  ;;  %3507 = vmatmul.mubr.bf16.gmra.mrb[16].mxu1 %v3632_v62  ;;  %v2115_v61 = vld [vmem:[%s4366_s26 + $0x58] sm:$0xff]  ;;  %v2114_v62 = vld [vmem:[%s4366_s26 + $0x50] sm:$0xff] }
  0x94   : > { %3478 = vmatprep.mubr.bf16.mxu0 %v3633_v63  ;;  %3510 = vmatprep.mubr.bf16.mxu1 %v3634_v0 }
  0x96   : > { %1269 = vperm.xlu1 %3604, %v975_v1   ;;  %1264 = vperm.xlu0 %3603, %v974_v2   ;;  %v2117_v1 = vld [vmem:[%s4366_s26 + $0x68] sm:$0xff]  ;;  %v2116_v2 = vld [vmem:[%s4366_s26 + $0x60] sm:$0xff] }
  0x9a   : > { %1029 = vperm.xlu1 %3604, %v927_v3   ;;  %1024 = vperm.xlu0 %3603, %v926_v4  }
  0x9b   : > { %3479 = vmatmul.mubr.bf16.gmra.mrb[20].mxu0 %v3635_v5  ;;  %3511 = vmatmul.mubr.bf16.gmra.mrb[20].mxu1 %v3636_v6  ;;  %v2119_v5 = vld [vmem:[%s4366_s26 + $0x78] sm:$0xff]  ;;  %v2118_v6 = vld [vmem:[%s4366_s26 + $0x70] sm:$0xff] }
  0x9c   : > { %3482 = vmatprep.mubr.bf16.mxu0 %v3637_v7  ;;  %3514 = vmatprep.mubr.bf16.mxu1 %v3638_v8 }
  0x9e   : > { %1189 = vperm.xlu1 %3604, %v959_v9   ;;  %1184 = vperm.xlu0 %3603, %v958_v10   ;;  %v2121_v9 = vld [vmem:[%s4366_s26 + $0x88] sm:$0xff]  ;;  %v2120_v10 = vld [vmem:[%s4366_s26 + $0x80] sm:$0xff] }
  0xa2   : > { %1119 = vperm.xlu1 %3604, %v945_v11   ;;  %1114 = vperm.xlu0 %3603, %v944_v12  }
  0xa3   : > { %3483 = vmatmul.mubr.bf16.gmra.mrb[24].mxu0 %v3639_v13  ;;  %3515 = vmatmul.mubr.bf16.gmra.mrb[24].mxu1 %v3640_v14  ;;  %v2123_v13 = vld [vmem:[%s4366_s26 + $0x98] sm:$0xff]  ;;  %v2122_v14 = vld [vmem:[%s4366_s26 + $0x90] sm:$0xff] }
  0xa4   : > { %3486 = vmatprep.mubr.bf16.mxu0 %v3641_v15  ;;  %3518 = vmatprep.mubr.bf16.mxu1 %v3642_v16 }
  0xa6   : > { %1279 = vperm.xlu1 %3604, %v977_v17   ;;  %1274 = vperm.xlu0 %3603, %v976_v18   ;;  %v2125_v17 = vld [vmem:[%s4366_s26 + $0xa8] sm:$0xff]  ;;  %v2124_v18 = vld [vmem:[%s4366_s26 + $0xa0] sm:$0xff] }
  0xaa   : > { %1039 = vperm.xlu1 %3604, %v929_v19   ;;  %1034 = vperm.xlu0 %3603, %v928_v20  }
  0xab   : > { %3487 = vmatmul.mubr.bf16.gmra.mrb[28].mxu0 %v3643_v21  ;;  %3519 = vmatmul.mubr.bf16.gmra.mrb[28].mxu1 %v3644_v22  ;;  %v2127_v21 = vld [vmem:[%s4366_s26 + $0xb8] sm:$0xff]  ;;  %v2126_v22 = vld [vmem:[%s4366_s26 + $0xb0] sm:$0xff] }
  0xae   : > { %1199 = vperm.xlu1 %3604, %v961_v23   ;;  %1194 = vperm.xlu0 %3603, %v960_v24  }
  0xb2   : > { %1129 = vperm.xlu1 %3604, %v947_v25   ;;  %1124 = vperm.xlu0 %3603, %v946_v26   ;;  %v2129_v25 = vld [vmem:[%s4366_s26 + $0xc8] sm:$0xff]  ;;  %v2128_v26 = vld [vmem:[%s4366_s26 + $0xc0] sm:$0xff] }
  0xb6   : > { %1289 = vperm.xlu1 %3604, %v979_v27   ;;  %1284 = vperm.xlu0 %3603, %v978_v28  }
  0xba   : > { %1049 = vperm.xlu1 %3604, %v931_v29   ;;  %1044 = vperm.xlu0 %3603, %v930_v30   ;;  %v2131_v29 = vld [vmem:[%s4366_s26 + $0xd8] sm:$0xff]  ;;  %v2130_v30 = vld [vmem:[%s4366_s26 + $0xd0] sm:$0xff] }
  0xbe   : > { %1209 = vperm.xlu1 %3604, %v963_v31   ;;  %1204 = vperm.xlu0 %3603, %v962_v32  }
  0xc2   : > { %1139 = vperm.xlu1 %3604, %v949_v33   ;;  %1134 = vperm.xlu0 %3603, %v948_v34   ;;  %v2133_v33 = vld [vmem:[%s4366_s26 + $0xe8] sm:$0xff]  ;;  %v2132_v34 = vld [vmem:[%s4366_s26 + $0xe0] sm:$0xff] }
  0xc6   : > { %1299 = vperm.xlu1 %3604, %v981_v35   ;;  %1294 = vperm.xlu0 %3603, %v980_v36  }
  0xca   : > { %1059 = vperm.xlu1 %3604, %v933_v37   ;;  %1054 = vperm.xlu0 %3603, %v932_v38   ;;  %v2135_v37 = vld [vmem:[%s4366_s26 + $0xf8] sm:$0xff]  ;;  %v2134_v38 = vld [vmem:[%s4366_s26 + $0xf0] sm:$0xff]  ;;  %s3930_s26 = sshll.u32 %s4003_s20, 4  ;;  %s3931_s26 = int_to_ptr.vmem [resolvable:$false] %s3930_s26 }
  0xcb   : > { %s3932_s10 = scalar_lea.vmem %s3931_s26, 4096 }
  0xce   : > { %1219 = vperm.xlu1 %3604, %v965_v39   ;;  %1214 = vperm.xlu0 %3603, %v964_v40  }
  0xd1   : > { %v4370_v43 = vpop.permute.xlu1 %1224  ;;  %v4372_v44 = vpop.permute.xlu0 %1064 }
  0xd2   : > { %2143 = vperm.xlu1 %3604, %v2105_v41   ;;  %2138 = vperm.xlu0 %3603, %v2104_v42   ;;  %v3647_v41 = vld [vmem:[%s4282_s17 + $0x4] ss:$16 sps:$4 sm:$0xff]   ;;  %v3650_v42 = vld [vmem:[%s4282_s17 + $0xc] ss:$16 sps:$4 sm:$0xff]  }
  0xd3   : > { %1814 = vmatprep.mubr.bf16.mxu1 %v3647_v41  ;;  %1975 = vmatprep.mubr.bf16.mxu0 %v3650_v42 }
  0xd5   : > { %v4376_v47 = vpop.permute.xlu1 %1229  ;;  %v4378_v48 = vpop.permute.xlu0 %1069 }
  0xd6   : > { %2153 = vperm.xlu1 %3604, %v2107_v45   ;;  %2148 = vperm.xlu0 %3603, %v2106_v46  }
  0xd9   : > { %v4382_v51 = vpop.permute.xlu1 %989  ;;  %v4384_v52 = vpop.permute.xlu0 %984 }
  0xda   : > { %2163 = vperm.xlu1 %3604, %v2109_v49   ;;  %2158 = vperm.xlu0 %3603, %v2108_v50  }
  0xdd   : > { %v4388_v55 = vpop.permute.xlu1 %1149  ;;  %v4390_v56 = vpop.permute.xlu0 %1144 }
  0xde   : > { %2173 = vperm.xlu1 %3604, %v2111_v53   ;;  %2168 = vperm.xlu0 %3603, %v2110_v54  }
  0xe1   : > { %v4394_v59 = vpop.permute.xlu1 %1079  ;;  %v4396_v60 = vpop.permute.xlu0 %1074 }
  0xe2   : > { %2183 = vperm.xlu1 %3604, %v2113_v57   ;;  %2178 = vperm.xlu0 %3603, %v2112_v58  }
  0xe5   : > { %v4400_v63 = vpop.permute.xlu1 %1239  ;;  %v4402_v0 = vpop.permute.xlu0 %1234 }
  0xe6   : > { %2193 = vperm.xlu1 %3604, %v2115_v61   ;;  %2188 = vperm.xlu0 %3603, %v2114_v62  }
  0xe9   : > { %v4406_v3 = vpop.permute.xlu1 %999  ;;  %v4408_v4 = vpop.permute.xlu0 %994 }
  0xea   : > { %2203 = vperm.xlu1 %3604, %v2117_v1   ;;  %2198 = vperm.xlu0 %3603, %v2116_v2  }
  0xed   : > { %v4412_v7 = vpop.permute.xlu1 %1159  ;;  %v4414_v8 = vpop.permute.xlu0 %1154 }
  0xee   : > { %2213 = vperm.xlu1 %3604, %v2119_v5   ;;  %2208 = vperm.xlu0 %3603, %v2118_v6  }
  0xf1   : > { %v4418_v11 = vpop.permute.xlu1 %1089  ;;  %v4420_v12 = vpop.permute.xlu0 %1084 }
  0xf2   : > { %2223 = vperm.xlu1 %3604, %v2121_v9   ;;  %2218 = vperm.xlu0 %3603, %v2120_v10  }
  0xf5   : > { %v4424_v15 = vpop.permute.xlu1 %1249  ;;  %v4426_v16 = vpop.permute.xlu0 %1244 }
  0xf6   : > { %2233 = vperm.xlu1 %3604, %v2123_v13   ;;  %2228 = vperm.xlu0 %3603, %v2122_v14  }
  0xf9   : > { %v4430_v19 = vpop.permute.xlu1 %1009  ;;  %v4432_v20 = vpop.permute.xlu0 %1004 }
  0xfa   : > { %2243 = vperm.xlu1 %3604, %v2125_v17   ;;  %2238 = vperm.xlu0 %3603, %v2124_v18  }
  0xfd   : > { %v4436_v23 = vpop.permute.xlu1 %1169  ;;  %v4438_v24 = vpop.permute.xlu0 %1164 }
  0xfe   : > { %2253 = vperm.xlu1 %3604, %v2127_v21   ;;  %2248 = vperm.xlu0 %3603, %v2126_v22  }
 0x101   : > { %v4442_v27 = vpop.permute.xlu1 %1099  ;;  %v4444_v28 = vpop.permute.xlu0 %1094 }
 0x102   : > { %2263 = vperm.xlu1 %3604, %v2129_v25   ;;  %2258 = vperm.xlu0 %3603, %v2128_v26  }
 0x105   : > { %v4448_v31 = vpop.permute.xlu1 %1259  ;;  %v4450_v32 = vpop.permute.xlu0 %1254 }
 0x106   : > { %2273 = vperm.xlu1 %3604, %v2131_v29   ;;  %2268 = vperm.xlu0 %3603, %v2130_v30  }
 0x109   : > { %v4454_v35 = vpop.permute.xlu1 %1019  ;;  %v4456_v36 = vpop.permute.xlu0 %1014 }
 0x10a   : > { %2283 = vperm.xlu1 %3604, %v2133_v33   ;;  %2278 = vperm.xlu0 %3603, %v2132_v34  }
 0x10d   : > { %v4460_v39 = vpop.permute.xlu1 %1179  ;;  %v4462_v40 = vpop.permute.xlu0 %1174 }
 0x10e   : > { %2293 = vperm.xlu1 %3604, %v2135_v37   ;;  %2288 = vperm.xlu0 %3603, %v2134_v38  }
 0x111   : > { %v4466_v45 = vpop.permute.xlu1 %1109  ;;  %v4468_v46 = vpop.permute.xlu0 %1104 }
 0x112   : > { %5040 = vst [vmem:[#allocation11_spill] sm:$0xff] %v4466_v45 }
 0x115   : > { %v4470_v49 = vpop.permute.xlu1 %1269  ;;  %v4472_v50 = vpop.permute.xlu0 %1264 }
 0x116   : > { %5041 = vst [vmem:[#allocation12_spill] sm:$0xff] %v4470_v49 }
 0x119   : > { %v4474_v53 = vpop.permute.xlu1 %1029  ;;  %v4476_v54 = vpop.permute.xlu0 %1024 }
 0x11d   : > { %v4478_v57 = vpop.permute.xlu1 %1189  ;;  %v4480_v58 = vpop.permute.xlu0 %1184 }
 0x121   : > { %v4482_v61 = vpop.permute.xlu1 %1119  ;;  %v4484_v62 = vpop.permute.xlu0 %1114 }
 0x125   : > { %v4486_v1 = vpop.permute.xlu1 %1279  ;;  %v4488_v2 = vpop.permute.xlu0 %1274 }
 0x129   : > { %v4490_v5 = vpop.permute.xlu1 %1039  ;;  %v4492_v6 = vpop.permute.xlu0 %1034 }
 0x12d   : > { %v4494_v9 = vpop.permute.xlu1 %1199  ;;  %v1195_v10 = vpop.permute.xlu0 %1194 }
 0x131   : > { %v4496_v13 = vpop.permute.xlu1 %1129  ;;  %v4498_v14 = vpop.permute.xlu0 %1124 }
 0x132   : > { %5042 = vst [vmem:[#allocation13_spill] sm:$0xff] %v4496_v13  ;;  %5043 = vst [vmem:[#allocation14_spill] sm:$0xff] %v4498_v14 }
 0x135   : > { %v4500_v17 = vpop.permute.xlu1 %1289  ;;  %v4502_v18 = vpop.permute.xlu0 %1284 }
 0x136   : > { %5044 = vst [vmem:[#allocation15_spill] sm:$0xff] %v4500_v17  ;;  %5045 = vst [vmem:[#allocation16_spill] sm:$0xff] %v4502_v18 }
 0x139   : > { %v4504_v21 = vpop.permute.xlu1 %1049  ;;  %v4506_v22 = vpop.permute.xlu0 %1044 }
 0x13d   : > { %v4508_v25 = vpop.permute.xlu1 %1209  ;;  %v4510_v26 = vpop.permute.xlu0 %1204 }
 0x141   : > { %v4512_v37 = vpop.permute.xlu1 %1139  ;;  %v4514_v38 = vpop.permute.xlu0 %1134 }
 0x142   : > { %5046 = vst [vmem:[#allocation17_spill] sm:$0xff] %v4512_v37  ;;  %5047 = vst [vmem:[#allocation18_spill] sm:$0xff] %v4514_v38 }
 0x146   : > { %v3460_v29 = vpop.f32.mrb[0].mxu0  ;;  %v3492_v30 = vpop.f32.mrb[0].mxu1 }
 0x147   : > { %v663_v33 = vpop.f32.mrb[1].mxu0  ;;  %v791_v34 = vpop.f32.mrb[1].mxu1  ;;  %v4517_v17 = vmul.f32 %v3460_v29, %v4408_v4  ;;  %v4520_v13 = vmul.f32 %v3492_v30, %v4414_v8 }
 0x148   : > { %v3461_v41 = vpop.f32.mrb[2].mxu0  ;;  %v3493_v42 = vpop.f32.mrb[2].mxu1  ;;  %v4529_v37 = vmul.f32 %v4384_v52, %v663_v33  ;;  %v4532_v38 = vmul.f32 %v4390_v56, %v791_v34 }
 0x149   : > { %v4523_v18 = vmul.f32 %v3461_v41, %v4406_v3  ;;  %v4526_v14 = vmul.f32 %v3493_v42, %v4412_v7  ;;  %v666_v49 = vpop.f32.mrb[3].mxu0  ;;  %v794_v45 = vpop.f32.mrb[3].mxu1 }
 0x14a   : > { %v4535_v4 = vmul.f32 %v4382_v51, %v666_v49  ;;  %v4538_v8 = vmul.f32 %v4388_v55, %v794_v45  ;;  %v4548_v49 = vpop.permute.xlu1 %1299  ;;  %v4550_v55 = vpop.permute.xlu0 %1294 }
 0x14b   : > { %5048 = vst [vmem:[#allocation19_spill] sm:$0xff] %v4548_v49  ;;  %5049 = vst [vmem:[#allocation20_spill] sm:$0xff] %v4550_v55 }
 0x14e   : > { %v3464_v56 = vpop.f32.mrb[4].mxu0  ;;  %v3496_v30 = vpop.f32.mrb[4].mxu1 }
 0x14f   : > { %v679_v33 = vpop.f32.mrb[5].mxu0  ;;  %v807_v51 = vpop.f32.mrb[5].mxu1  ;;  %v4556_v42 = vmul.f32 %v3464_v56, %v4456_v36  ;;  %v4559_v7 = vmul.f32 %v3496_v30, %v4462_v40 }
 0x150   : > { %v4553_v45 = vmul.f32 %v4432_v20, %v679_v33  ;;  %v3465_v34 = vpop.f32.mrb[6].mxu0  ;;  %v3497_v41 = vpop.f32.mrb[6].mxu1  ;;  %v4568_v55 = vmul.f32 %v4438_v24, %v807_v51 }
 0x151   : > { %5050 = vst [vmem:[#allocation21_spill] sm:$0xff] %v4556_v42  ;;  %5051 = vst [vmem:[#allocation22_spill] sm:$0xff] %v4559_v7  ;;  %v4562_v3 = vmul.f32 %v3465_v34, %v4454_v35  ;;  %v4565_v52 = vmul.f32 %v3497_v41, %v4460_v39  ;;  %v682_v29 = vpop.f32.mrb[7].mxu0  ;;  %v810_v49 = vpop.f32.mrb[7].mxu1 }
 0x152   : > { %v4571_v20 = vmul.f32 %v4430_v19, %v682_v29  ;;  %v4574_v36 = vmul.f32 %v4436_v23, %v810_v49  ;;  %v1060_v29 = vpop.permute.xlu1 %1059  ;;  %v1055_v51 = vpop.permute.xlu0 %1054 }
 0x153   : > { %5052 = vst [vmem:[#allocation23_spill] sm:$0xff] %v4565_v52 }
 0x156   : > { %v3468_v24 = vpop.f32.mrb[8].mxu0  ;;  %v3500_v30 = vpop.f32.mrb[8].mxu1 }
 0x157   : > { %v695_v33 = vpop.f32.mrb[9].mxu0  ;;  %v823_v19 = vpop.f32.mrb[9].mxu1  ;;  %v4585_v34 = vmul.f32 %v3468_v24, %v4492_v6  ;;  %v4587_v41 = vmul.f32 %v3500_v30, %v1195_v10 }
 0x158   : > { %v3469_v23 = vpop.f32.mrb[10].mxu0  ;;  %v3501_v49 = vpop.f32.mrb[10].mxu1  ;;  %v4596_v7 = vmul.f32 %v4476_v54, %v695_v33  ;;  %v4599_v52 = vmul.f32 %v4480_v58, %v823_v19 }
 0x159   : > { %5053 = vst [vmem:[#allocation24_spill] sm:$0xff] %v4587_v41  ;;  %v4590_v35 = vmul.f32 %v3469_v23, %v4490_v5  ;;  %v4593_v40 = vmul.f32 %v3501_v49, %v4494_v9  ;;  %v698_v56 = vpop.f32.mrb[11].mxu0  ;;  %v826_v39 = vpop.f32.mrb[11].mxu1 }
 0x15a   : > { %v4602_v42 = vmul.f32 %v4474_v53, %v698_v56  ;;  %v4605_v6 = vmul.f32 %v4478_v57, %v826_v39  ;;  %v1220_v56 = vpop.permute.xlu1 %1219  ;;  %v1215_v33 = vpop.permute.xlu0 %1214 }
 0x15b   : > { %5054 = vst [vmem:[#allocation25_spill] sm:$0xff] %v4593_v40 }
 0x15e   : > { %v3472_v58 = vpop.f32.mrb[12].mxu0  ;;  %v3504_v24 = vpop.f32.mrb[12].mxu1 }
 0x15f   : > { %v711_v30 = vpop.f32.mrb[13].mxu0  ;;  %v839_v53 = vpop.f32.mrb[13].mxu1  ;;  %v4615_v19 = vmul.f32 %v3472_v58, %v1055_v51  ;;  %v4617_v23 = vmul.f32 %v3504_v24, %v1215_v33 }
 0x160   : > { %v3473_v57 = vpop.f32.mrb[14].mxu0  ;;  %v3505_v39 = vpop.f32.mrb[14].mxu1  ;;  %v4624_v54 = vmul.f32 %v4506_v22, %v711_v30  ;;  %v4627_v41 = vmul.f32 %v4510_v26, %v839_v53 }
 0x161   : > { %5055 = vst [vmem:[#allocation26_spill] sm:$0xff] %v4615_v19  ;;  %5056 = vst [vmem:[#allocation27_spill] sm:$0xff] %v4617_v23  ;;  %v4619_v49 = vmul.f32 %v3473_v57, %v1060_v29  ;;  %v4621_v9 = vmul.f32 %v3505_v39, %v1220_v56  ;;  %v714_v5 = vpop.f32.mrb[15].mxu0  ;;  %v842_v10 = vpop.f32.mrb[15].mxu1 }
 0x162   : > { %v4630_v40 = vmul.f32 %v4504_v21, %v714_v5  ;;  %v4633_v51 = vmul.f32 %v4508_v25, %v842_v10 }
 0x163   : > { %5057 = vst [vmem:[#allocation28_spill] sm:$0xff] %v4619_v49  ;;  %5058 = vst [vmem:[#allocation29_spill] sm:$0xff] %v4621_v9 }
 0x166   : > { %v3476_v26 = vpop.f32.mrb[16].mxu0  ;;  %v3508_v30 = vpop.f32.mrb[16].mxu1 }
 0x167   : > { %v727_v53 = vpop.f32.mrb[17].mxu0  ;;  %v855_v21 = vpop.f32.mrb[17].mxu1  ;;  %v1320_v25 = vmul.f32 %v3476_v26, %v4396_v60  ;;  %v1352_v10 = vmul.f32 %v3508_v30, %v4402_v0 }
 0x168   : > { %v3477_v5 = vpop.f32.mrb[18].mxu0  ;;  %v3509_v56 = vpop.f32.mrb[18].mxu1  ;;  %v1318_v29 = vmul.f32 %v4372_v44, %v727_v53  ;;  %v1350_v22 = vmul.f32 %v4370_v43, %v855_v21  ;;  %v5059_v44 = vpack.c.bf16 %v4535_v4, %v4529_v37  ;;  %v5060_v43 = vpack.c.bf16 %v4538_v8, %v4532_v38 }
 0x169   : > { %v1321_v33 = vmul.f32 %v3477_v5, %v4394_v59  ;;  %v1353_v57 = vmul.f32 %v3509_v56, %v4400_v63  ;;  %v730_v39 = vpop.f32.mrb[19].mxu0  ;;  %v858_v58 = vpop.f32.mrb[19].mxu1 }
 0x16a   : > { %v1319_v24 = vmul.f32 %v4378_v48, %v730_v39  ;;  %v1351_v23 = vmul.f32 %v4376_v47, %v858_v58 }
 0x16b   : > { %v1375_v9 = vpack.c.bf16 %v1321_v33, %v1320_v25  ;;  %v1391_v19 = vpack.c.bf16 %v1353_v57, %v1352_v10  ;;  %v5066_v10 = vld [vmem:[#allocation12_spill] sm:$0xff] }
 0x16c   : > { %v1374_v49 = vpack.c.bf16 %v1319_v24, %v1318_v29  ;;  %v1390_v60 = vpack.c.bf16 %v1351_v23, %v1350_v22 }
 0x16e   : > { %v3480_v26 = vpop.f32.mrb[20].mxu0  ;;  %v3512_v0 = vpop.f32.mrb[20].mxu1  ;;  %3218 = vmatprep.subr.bf16.mxu1 %v1374_v49  ;;  %3330 = vmatprep.subr.bf16.mxu0 %v1390_v60 }
 0x16f   : > { %v743_v59 = vpop.f32.mrb[21].mxu0  ;;  %v871_v63 = vpop.f32.mrb[21].mxu1  ;;  %3219 = vmatpush3.bf16.msra.mxu1 %v5059_v44  ;;  %3331 = vmatpush3.bf16.msra.mxu0 %v5060_v43  ;;  %v1324_v23 = vmul.f32 %v3480_v26, %v4444_v28  ;;  %v1356_v49 = vmul.f32 %v3512_v0, %v4450_v32  ;;  %v5062_v28 = vpack.c.bf16 %v4526_v14, %v4520_v13 }
 0x170   : > { %v1354_v30 = vmul.f32 %v4426_v16, %v871_v63  ;;  %v3481_v47 = vpop.f32.mrb[22].mxu0  ;;  %v3513_v48 = vpop.f32.mrb[22].mxu1  ;;  %3220 = vmatprep.subr.bf16.mxu1 %v1375_v9  ;;  %3332 = vmatprep.subr.bf16.mxu0 %v1391_v19  ;;  %v1322_v37 = vmul.f32 %v4420_v12, %v743_v59  ;;  %v5061_v9 = vpack.c.bf16 %v4523_v18, %v4517_v17 }
 0x171   : > { %v1325_v29 = vmul.f32 %v3481_v47, %v4442_v27  ;;  %v1357_v16 = vmul.f32 %v3513_v48, %v4448_v31  ;;  %v746_v58 = vpop.f32.mrb[23].mxu0  ;;  %v874_v24 = vpop.f32.mrb[23].mxu1  ;;  %v5064_v17 = vpack.c.bf16 %v4574_v36, %v4568_v55  ;;  %v5065_v55 = vld [vmem:[#allocation11_spill] sm:$0xff]  ;;  %v5074_v47 = vld [vmem:[#allocation18_spill] sm:$0xff] }
 0x172   : > { %v1323_v4 = vmul.f32 %v4418_v11, %v746_v58  ;;  %v1355_v38 = vmul.f32 %v4424_v15, %v874_v24  ;;  %v5063_v15 = vpack.c.bf16 %v4571_v20, %v4553_v45  ;;  %v5077_v58 = vld [vmem:[#allocation19_spill] sm:$0xff] }
 0x173   : > { %v1377_v8 = vpack.c.bf16 %v1325_v29, %v1324_v23  ;;  %v1393_v22 = vpack.c.bf16 %v1357_v16, %v1356_v49  ;;  %3221 = vmatpush3.bf16.msra.mxu1 %v5061_v9  ;;  %3333 = vmatpush3.bf16.msra.mxu0 %v5062_v28  ;;  %v5075_v23 = vld [vmem:[#allocation20_spill] sm:$0xff]  ;;  %v5076_v29 = vld [vmem:[#allocation17_spill] sm:$0xff] }
 0x174   : > { %v1376_v27 = vpack.c.bf16 %v1323_v4, %v1322_v37  ;;  %v1392_v31 = vpack.c.bf16 %v1355_v38, %v1354_v30  ;;  %v5072_v30 = vpack.c.bf16 %v4602_v42, %v4596_v7  ;;  %v5078_v7 = vld [vmem:[#allocation14_spill] sm:$0xff]  ;;  %v5079_v38 = vld [vmem:[#allocation16_spill] sm:$0xff] }
 0x176   : > { %v3484_v32 = vpop.f32.mrb[24].mxu0  ;;  %v3516_v19 = vpop.f32.mrb[24].mxu1  ;;  %3222 = vmatprep.subr.bf16.mxu1 %v1376_v27  ;;  %3334 = vmatprep.subr.bf16.mxu0 %v1392_v31  ;;  %v5082_v31 = vpack.c.bf16 %v4590_v35, %v4585_v34  ;;  %v3645_v35 = vld [vmem:[%s4282_s17] ss:$16 sps:$4 sm:$0xff]   ;;  %v3648_v34 = vld [vmem:[%s4282_s17 + $0x8] ss:$16 sps:$4 sm:$0xff]  }
 0x177   : > { %v759_v12 = vpop.f32.mrb[25].mxu0  ;;  %v887_v11 = vpop.f32.mrb[25].mxu1  ;;  %3223 = vmatpush3.bf16.msra.mxu1 %v5063_v15  ;;  %3335 = vmatpush3.bf16.msra.mxu0 %v5064_v17  ;;  %v1328_v13 = vmul.f32 %v3484_v32, %v4484_v62  ;;  %v1360_v14 = vmul.f32 %v3516_v19, %v4488_v2  ;;  %v5067_v62 = vld [vmem:[#allocation21_spill] sm:$0xff]  ;;  %v5069_v2 = vld [vmem:[#allocation23_spill] sm:$0xff]  ;;  %v5084_v19 = vld [vmem:[#allocation24_spill] sm:$0xff]  ;;  %v5086_v17 = vpack.c.bf16 %v4630_v40, %v4624_v54 }
 0x178   : > { %v3485_v18 = vpop.f32.mrb[26].mxu0  ;;  %v3517_v53 = vpop.f32.mrb[26].mxu1  ;;  %3224 = vmatprep.subr.bf16.mxu1 %v1377_v8  ;;  %3336 = vmatprep.subr.bf16.mxu0 %v1393_v22  ;;  %v1326_v45 = vmul.f32 %v4468_v46, %v759_v12  ;;  %v1358_v20 = vmul.f32 %v4472_v50, %v887_v11  ;;  %v5068_v60 = vpack.c.bf16 %v4562_v3, %v5067_v62  ;;  %v5081_v22 = vld [vmem:[#allocation15_spill] sm:$0xff]  ;;  %v5083_v32 = vld [vmem:[#allocation25_spill] sm:$0xff]  ;;  %v3671_v62 = vld [vmem:[%s4282_s17 + $0x8c] ss:$16 sps:$4 sm:$0xff]  }
 0x179   : > { %v1329_v21 = vmul.f32 %v3485_v18, %v4482_v61  ;;  %v1361_v5 = vmul.f32 %v3517_v53, %v4486_v1  ;;  %v762_v56 = vpop.f32.mrb[27].mxu0  ;;  %v890_v25 = vpop.f32.mrb[27].mxu1  ;;  %v5070_v61 = vld [vmem:[#allocation22_spill] sm:$0xff]  ;;  %v5073_v3 = vpack.c.bf16 %v4605_v6, %v4599_v52  ;;  %v5080_v6 = vld [vmem:[#allocation13_spill] sm:$0xff]  ;;  %v5085_v12 = vpack.c.bf16 %v5083_v32, %v5084_v19  ;;  %v5088_v53 = vld [vmem:[#allocation28_spill] sm:$0xff] }
 0x17a   : > { %v1327_v36 = vmul.f32 %v5065_v55, %v762_v56  ;;  %v1359_v33 = vmul.f32 %v5066_v10, %v890_v25  ;;  %v5071_v26 = vpack.c.bf16 %v5069_v2, %v5070_v61  ;;  %v5087_v18 = vpack.c.bf16 %v4633_v51, %v4627_v41  ;;  %v3651_v40 = vld [vmem:[%s4282_s17 + $0x24] ss:$16 sps:$4 sm:$0xff]   ;;  %v3653_v41 = vld [vmem:[%s4282_s17 + $0x2c] ss:$16 sps:$4 sm:$0xff]   ;;  %v3655_v54 = vld [vmem:[%s4282_s17 + $0x20] ss:$16 sps:$4 sm:$0xff]  }
 0x17b   : > { %v1379_v57 = vpack.c.bf16 %v1329_v21, %v1328_v13  ;;  %v1395_v39 = vpack.c.bf16 %v1361_v5, %v1360_v14  ;;  %3225 = vmatpush3.bf16.msra.mxu1 %v5068_v60  ;;  %v5089_v13 = vld [vmem:[#allocation26_spill] sm:$0xff]  ;;  %v5091_v21 = vld [vmem:[#allocation29_spill] sm:$0xff]  ;;  %v5092_v5 = vld [vmem:[#allocation27_spill] sm:$0xff] }
 0x17c   : > { %3337 = vmatpush3.bf16.msra.mxu0 %v5071_v26  ;;  %v1378_v1 = vpack.c.bf16 %v1327_v36, %v1326_v45  ;;  %v1394_v0 = vpack.c.bf16 %v1359_v33, %v1358_v20  ;;  %v5090_v14 = vpack.c.bf16 %v5088_v53, %v5089_v13  ;;  %v5093_v56 = vpack.c.bf16 %v5091_v21, %v5092_v5  ;;  %v3656_v51 = vld [vmem:[%s4282_s17 + $0x28] ss:$16 sps:$4 sm:$0xff]   ;;  %v3657_v25 = vld [vmem:[%s4282_s17 + $0x44] ss:$16 sps:$4 sm:$0xff]   ;;  %v3659_v45 = vld [vmem:[%s4282_s17 + $0x4c] ss:$16 sps:$4 sm:$0xff]  }
 0x17d   : > { %v3661_v20 = vld [vmem:[%s4282_s17 + $0x40] ss:$16 sps:$4 sm:$0xff]   ;;  %v3662_v55 = vld [vmem:[%s4282_s17 + $0x48] ss:$16 sps:$4 sm:$0xff]   ;;  %v3663_v36 = vld [vmem:[%s4282_s17 + $0x64] ss:$16 sps:$4 sm:$0xff]  }
 0x17e   : > { %v3488_v59 = vpop.f32.mrb[28].mxu0  ;;  %v3520_v46 = vpop.f32.mrb[28].mxu1  ;;  %3226 = vmatprep.subr.bf16.mxu1 %v1378_v1  ;;  %3338 = vmatprep.subr.bf16.mxu0 %v1394_v0  ;;  %v3665_v10 = vld [vmem:[%s4282_s17 + $0x6c] ss:$16 sps:$4 sm:$0xff]   ;;  %v3667_v33 = vld [vmem:[%s4282_s17 + $0x60] ss:$16 sps:$4 sm:$0xff]  }
 0x17f   : > { %v775_v50 = vpop.f32.mrb[29].mxu0  ;;  %v903_v63 = vpop.f32.mrb[29].mxu1  ;;  %3227 = vmatpush3.bf16.msra.mxu1 %v5072_v30  ;;  %v1332_v48 = vmul.f32 %v3488_v59, %v5074_v47  ;;  %v1364_v49 = vmul.f32 %v3520_v46, %v5075_v23  ;;  %v3673_v60 = vld [vmem:[%s4282_s17 + $0x80] ss:$16 sps:$4 sm:$0xff]   ;;  %v3674_v2 = vld [vmem:[%s4282_s17 + $0x88] ss:$16 sps:$4 sm:$0xff]  }
 0x180   : > { %3339 = vmatpush3.bf16.msra.mxu0 %v5073_v3  ;;  %v3489_v44 = vpop.f32.mrb[30].mxu0  ;;  %v3521_v43 = vpop.f32.mrb[30].mxu1  ;;  %3228 = vmatprep.subr.bf16.mxu1 %v1379_v57  ;;  %v1330_v42 = vmul.f32 %v5078_v7, %v775_v50  ;;  %v1362_v52 = vmul.f32 %v5079_v38, %v903_v63  ;;  %v3668_v57 = vld [vmem:[%s4282_s17 + $0x68] ss:$16 sps:$4 sm:$0xff]   ;;  %v3675_v61 = vld [vmem:[%s4282_s17 + $0xa4] ss:$16 sps:$4 sm:$0xff]  }
 0x181   : > { %3340 = vmatprep.subr.bf16.mxu0 %v1395_v39  ;;  %v1333_v16 = vmul.f32 %v3489_v44, %v5076_v29  ;;  %v1365_v24 = vmul.f32 %v3521_v43, %v5077_v58  ;;  %v778_v37 = vpop.f32.mrb[31].mxu0  ;;  %v906_v4 = vpop.f32.mrb[31].mxu1  ;;  %v3669_v39 = vld [vmem:[%s4282_s17 + $0x84] ss:$16 sps:$4 sm:$0xff]   ;;  %v3677_v26 = vld [vmem:[%s4282_s17 + $0xac] ss:$16 sps:$4 sm:$0xff]  }
 0x182   : > { %v1331_v8 = vmul.f32 %v5080_v6, %v778_v37  ;;  %v1363_v9 = vmul.f32 %v5081_v22, %v906_v4  ;;  %v3679_v1 = vld [vmem:[%s4282_s17 + $0xa0] ss:$16 sps:$4 sm:$0xff]   ;;  %v3680_v0 = vld [vmem:[%s4282_s17 + $0xa8] ss:$16 sps:$4 sm:$0xff]   ;;  %v3681_v59 = vld [vmem:[%s4282_s17 + $0xc4] ss:$16 sps:$4 sm:$0xff]  }
 0x183   : > { %v1381_v28 = vpack.c.bf16 %v1333_v16, %v1332_v48  ;;  %v1397_v27 = vpack.c.bf16 %v1365_v24, %v1364_v49  ;;  %3229 = vmatpush3.bf16.msra.mxu1 %v5082_v31  ;;  %v3683_v46 = vld [vmem:[%s4282_s17 + $0xcc] ss:$16 sps:$4 sm:$0xff]   ;;  %v3685_v50 = vld [vmem:[%s4282_s17 + $0xc0] ss:$16 sps:$4 sm:$0xff]   ;;  %v3686_v63 = vld [vmem:[%s4282_s17 + $0xc8] ss:$16 sps:$4 sm:$0xff]  }
 0x184   : > { %3341 = vmatpush3.bf16.msra.mxu0 %v5085_v12  ;;  %v1380_v11 = vpack.c.bf16 %v1331_v8, %v1330_v42  ;;  %v1396_v15 = vpack.c.bf16 %v1363_v9, %v1362_v52  ;;  %v3687_v30 = vld [vmem:[%s4282_s17 + $0xe4] ss:$16 sps:$4 sm:$0xff]   ;;  %v3689_v3 = vld [vmem:[%s4282_s17 + $0xec] ss:$16 sps:$4 sm:$0xff]   ;;  %v3691_v44 = vld [vmem:[%s4282_s17 + $0xe0] ss:$16 sps:$4 sm:$0xff]  }
 0x185   : > { %v3692_v43 = vld [vmem:[%s4282_s17 + $0xe8] ss:$16 sps:$4 sm:$0xff]   ;;  %v3693_v47 = vld [vmem:[%s4282_s17 + $0x104] ss:$16 sps:$4 sm:$0xff]   ;;  %v3695_v48 = vld [vmem:[%s4282_s17 + $0x10c] ss:$16 sps:$4 sm:$0xff]  }
 0x186   : > { %3230 = vmatprep.subr.bf16.mxu1 %v1380_v11  ;;  %3342 = vmatprep.subr.bf16.mxu0 %v1396_v15  ;;  %v3697_v23 = vld [vmem:[%s4282_s17 + $0x100] ss:$16 sps:$4 sm:$0xff]   ;;  %v3698_v49 = vld [vmem:[%s4282_s17 + $0x108] ss:$16 sps:$4 sm:$0xff]   ;;  %v3699_v29 = vld [vmem:[%s4282_s17 + $0x124] ss:$16 sps:$4 sm:$0xff]  }
 0x187   : > { %3231 = vmatpush3.bf16.msra.mxu1 %v5086_v17  ;;  %v3701_v16 = vld [vmem:[%s4282_s17 + $0x12c] ss:$16 sps:$4 sm:$0xff]   ;;  %v3703_v58 = vld [vmem:[%s4282_s17 + $0x120] ss:$16 sps:$4 sm:$0xff]   ;;  %v3704_v24 = vld [vmem:[%s4282_s17 + $0x128] ss:$16 sps:$4 sm:$0xff]  }
 0x188   : > { %3343 = vmatpush3.bf16.msra.mxu0 %v5087_v18  ;;  %3232 = vmatprep.subr.bf16.mxu1 %v1381_v28  ;;  %v3705_v37 = vld [vmem:[%s4282_s17 + $0x144] ss:$16 sps:$4 sm:$0xff]   ;;  %v3707_v4 = vld [vmem:[%s4282_s17 + $0x14c] ss:$16 sps:$4 sm:$0xff]   ;;  %v3709_v7 = vld [vmem:[%s4282_s17 + $0x140] ss:$16 sps:$4 sm:$0xff]  }
 0x189   : > { %3344 = vmatprep.subr.bf16.mxu0 %v1397_v27  ;;  %v3710_v42 = vld [vmem:[%s4282_s17 + $0x148] ss:$16 sps:$4 sm:$0xff]   ;;  %v3711_v38 = vld [vmem:[%s4282_s17 + $0x164] ss:$16 sps:$4 sm:$0xff]   ;;  %v3713_v52 = vld [vmem:[%s4282_s17 + $0x16c] ss:$16 sps:$4 sm:$0xff]  }
 0x18a   : > { %v3715_v6 = vld [vmem:[%s4282_s17 + $0x160] ss:$16 sps:$4 sm:$0xff]   ;;  %v3716_v8 = vld [vmem:[%s4282_s17 + $0x168] ss:$16 sps:$4 sm:$0xff]   ;;  %v3717_v22 = vld [vmem:[%s4282_s17 + $0x184] ss:$16 sps:$4 sm:$0xff]  }
 0x18b   : > { %3233 = vmatpush3.bf16.msra.mxu1 %v5090_v14  ;;  %v3719_v9 = vld [vmem:[%s4282_s17 + $0x18c] ss:$16 sps:$4 sm:$0xff]   ;;  %v3721_v28 = vld [vmem:[%s4282_s17 + $0x180] ss:$16 sps:$4 sm:$0xff]   ;;  %v3722_v27 = vld [vmem:[%s4282_s17 + $0x188] ss:$16 sps:$4 sm:$0xff]  }
 0x18c   : > { %3345 = vmatpush3.bf16.msra.mxu0 %v5093_v56  ;;  %v3723_v31 = vld [vmem:[%s4282_s17 + $0x1a4] ss:$16 sps:$4 sm:$0xff]   ;;  %v3725_v32 = vld [vmem:[%s4282_s17 + $0x1ac] ss:$16 sps:$4 sm:$0xff]   ;;  %v3727_v19 = vld [vmem:[%s4282_s17 + $0x1a0] ss:$16 sps:$4 sm:$0xff]  }
 0x18d   : > { %v3728_v12 = vld [vmem:[%s4282_s17 + $0x1a8] ss:$16 sps:$4 sm:$0xff]   ;;  %v3729_v11 = vld [vmem:[%s4282_s17 + $0x1c4] ss:$16 sps:$4 sm:$0xff]   ;;  %v3731_v15 = vld [vmem:[%s4282_s17 + $0x1cc] ss:$16 sps:$4 sm:$0xff]  }
 0x18e   : > { %1815 = vmatmul.mubr.bf16.vlgmr.msra.gmra.mrb[32].mxu1 %v3645_v35  ;;  %v3733_v17 = vld [vmem:[%s4282_s17 + $0x1c0] ss:$16 sps:$4 sm:$0xff]   ;;  %v3734_v18 = vld [vmem:[%s4282_s17 + $0x1c8] ss:$16 sps:$4 sm:$0xff]   ;;  %v3735_v35 = vld [vmem:[%s4282_s17 + $0x1e4] ss:$16 sps:$4 sm:$0xff]  }
 0x18f   : > { %1976 = vmatmul.mubr.bf16.vlgmr.msra.gmra.mrb[32].mxu0 %v3648_v34  ;;  %1822 = vmatprep.mubr.bf16.mxu1 %v3651_v40  ;;  %v3737_v34 = vld [vmem:[%s4282_s17 + $0x1ec] ss:$16 sps:$4 sm:$0xff]   ;;  %v3739_v53 = vld [vmem:[%s4282_s17 + $0x1e0] ss:$16 sps:$4 sm:$0xff]   ;;  %v3740_v13 = vld [vmem:[%s4282_s17 + $0x1e8] ss:$16 sps:$4 sm:$0xff]  }
 0x190   : > { %1983 = vmatprep.mubr.bf16.mxu0 %v3653_v41  ;;  %s291_s17 = sand.u32 1, %s3988_s22  }
 0x191   : > { %s2869_s11 = sshll.u32 %s291_s17, 7  ;;  %s4971_s19 = scalar_lea.sflag [#allocation4], %s291_s17 }
 0x192   : > { %s4830_s15 = scalar_lea.vmem [#allocation7], %s2869_s11 }
 0x193   : > { %s2765_s9 = sshll.u32 %s4830_s15, 4  ;;  %s4966_s9 = int_to_ptr.vmem [resolvable:$true] %s2765_s9 }
 0x194   : > { %s3926_s25 = scalar_lea.vmem %s4966_s9, 2048  ;;  %p3933_p4 = scmp.lt.s32.totalorder %s4966_s9, %s3931_s26 }
 0x195   : > { %p3927_p10 = scmp.ne.s32.totalorder %s4966_s9, %s3926_s25  ;;  %p3934_p7 = scmp.lt.s32.totalorder %s3932_s10, %s3926_s25 }
 0x196   : > { %1823 = vmatmul.mubr.bf16.gmra.mrb[36].mxu1 %v3655_v54 }
 0x197   : > { %1984 = vmatmul.mubr.bf16.gmra.mrb[36].mxu0 %v3656_v51  ;;  %1830 = vmatprep.mubr.bf16.mxu1 %v3657_v25  ;;  %p3928_p2 = pnand %p3927_p10, %p5094_p1  ;;  %p3935_p8 = por %p3934_p7, %p3933_p4 }
 0x198   : > { %1991 = vmatprep.mubr.bf16.mxu0 %v3659_v45 }
 0x199   : > { %p3929_p3 = pneg %p3928_p2 }
 0x19b   : > { %p3936_p11 = pnand %p3935_p8, %p3929_p3 }
 0x19e   : > { %1831 = vmatmul.mubr.bf16.gmra.mrb[40].mxu1 %v3661_v20 }
 0x19f   : > { %1992 = vmatmul.mubr.bf16.gmra.mrb[40].mxu0 %v3662_v55  ;;  %1838 = vmatprep.mubr.bf16.mxu1 %v3663_v36 }
 0x1a0   : > { %1999 = vmatprep.mubr.bf16.mxu0 %v3665_v10  ;;  %v2139_v10 = vpop.permute.xlu0 %2138 }
 0x1a6   : > { %1839 = vmatmul.mubr.bf16.gmra.mrb[44].mxu1 %v3667_v33  ;;  %v4788_v33 = vld [vmem:[%s5015_s3] ss:$0 sm:$0xff] }
 0x1a7   : > { %2000 = vmatmul.mubr.bf16.gmra.mrb[44].mxu0 %v3668_v57  ;;  %1846 = vmatprep.mubr.bf16.mxu1 %v3669_v39 }
 0x1a8   : > { %2007 = vmatprep.mubr.bf16.mxu0 %v3671_v62  ;;  %v2144_v62 = vpop.permute.xlu1 %2143 }
 0x1ae   : > { %1847 = vmatmul.mubr.bf16.gmra.mrb[48].mxu1 %v3673_v60 }
 0x1af   : > { %2008 = vmatmul.mubr.bf16.gmra.mrb[48].mxu0 %v3674_v2  ;;  %1854 = vmatprep.mubr.bf16.mxu1 %v3675_v61 }
 0x1b0   : > { %2015 = vmatprep.mubr.bf16.mxu0 %v3677_v26 }
 0x1b6   : > { %1855 = vmatmul.mubr.bf16.gmra.mrb[52].mxu1 %v3679_v1 }
 0x1b7   : > { %2016 = vmatmul.mubr.bf16.gmra.mrb[52].mxu0 %v3680_v0  ;;  %1862 = vmatprep.mubr.bf16.mxu1 %v3681_v59 }
 0x1b8   : > { %2023 = vmatprep.mubr.bf16.mxu0 %v3683_v46 }
 0x1be   : > { %1863 = vmatmul.mubr.bf16.gmra.mrb[56].mxu1 %v3685_v50 }
 0x1bf   : > { %2024 = vmatmul.mubr.bf16.gmra.mrb[56].mxu0 %v3686_v63  ;;  %1870 = vmatprep.mubr.bf16.mxu1 %v3687_v30 }
 0x1c0   : > { %2031 = vmatprep.mubr.bf16.mxu0 %v3689_v3 }
 0x1c6   : > { %1871 = vmatmul.mubr.bf16.gmra.mrb[60].mxu1 %v3691_v44 }
 0x1c7   : > { %2032 = vmatmul.mubr.bf16.gmra.mrb[60].mxu0 %v3692_v43  ;;  %1878 = vmatprep.mubr.bf16.mxu1 %v3693_v47 }
 0x1c8   : > { %2039 = vmatprep.mubr.bf16.mxu0 %v3695_v48 }
 0x1ce   : > { %1879 = vmatmul.mubr.bf16.gmra.mrb[64].mxu1 %v3697_v23 }
 0x1cf   : > { %2040 = vmatmul.mubr.bf16.gmra.mrb[64].mxu0 %v3698_v49  ;;  %1886 = vmatprep.mubr.bf16.mxu1 %v3699_v29  ;;  %v2149_v49 = vpop.permute.xlu0 %2148 }
 0x1d0   : > { %2047 = vmatprep.mubr.bf16.mxu0 %v3701_v16 }
 0x1d6   : > { %1887 = vmatmul.mubr.bf16.gmra.mrb[68].mxu1 %v3703_v58  ;;  %v2154_v58 = vpop.permute.xlu1 %2153 }
 0x1d7   : > { %2048 = vmatmul.mubr.bf16.gmra.mrb[68].mxu0 %v3704_v24  ;;  %1894 = vmatprep.mubr.bf16.mxu1 %v3705_v37 }
 0x1d8   : > { %2055 = vmatprep.mubr.bf16.mxu0 %v3707_v4 }
 0x1de   : > { %1895 = vmatmul.mubr.bf16.gmra.mrb[72].mxu1 %v3709_v7 }
 0x1df   : > { %2056 = vmatmul.mubr.bf16.gmra.mrb[72].mxu0 %v3710_v42  ;;  %1902 = vmatprep.mubr.bf16.mxu1 %v3711_v38 }
 0x1e0   : > { %2063 = vmatprep.mubr.bf16.mxu0 %v3713_v52 }
 0x1e6   : > { %1903 = vmatmul.mubr.bf16.gmra.mrb[76].mxu1 %v3715_v6 }
 0x1e7   : > { %2064 = vmatmul.mubr.bf16.gmra.mrb[76].mxu0 %v3716_v8  ;;  %1910 = vmatprep.mubr.bf16.mxu1 %v3717_v22 }
 0x1e8   : > { %2071 = vmatprep.mubr.bf16.mxu0 %v3719_v9 }
 0x1ee   : > { %1911 = vmatmul.mubr.bf16.gmra.mrb[80].mxu1 %v3721_v28 }
 0x1ef   : > { %2072 = vmatmul.mubr.bf16.gmra.mrb[80].mxu0 %v3722_v27  ;;  %1918 = vmatprep.mubr.bf16.mxu1 %v3723_v31 }
 0x1f0   : > { %2079 = vmatprep.mubr.bf16.mxu0 %v3725_v32 }
 0x1f6   : > { %1919 = vmatmul.mubr.bf16.gmra.mrb[84].mxu1 %v3727_v19 }
 0x1f7   : > { %2080 = vmatmul.mubr.bf16.gmra.mrb[84].mxu0 %v3728_v12  ;;  %1926 = vmatprep.mubr.bf16.mxu1 %v3729_v11 }
 0x1f8   : > { %2087 = vmatprep.mubr.bf16.mxu0 %v3731_v15  ;;  %v2159_v15 = vpop.permute.xlu0 %2158 }
 0x1fe   : > { %1927 = vmatmul.mubr.bf16.gmra.mrb[88].mxu1 %v3733_v17 }
 0x1ff   : > { %2088 = vmatmul.mubr.bf16.gmra.mrb[88].mxu0 %v3734_v18  ;;  %1934 = vmatprep.mubr.bf16.mxu1 %v3735_v35 }
 0x200   : > { %2095 = vmatprep.mubr.bf16.mxu0 %v3737_v34 }
 0x206   : > { %1935 = vmatmul.mubr.bf16.gmra.mrb[92].mxu1 %v3739_v53  ;;  %v2164_v53 = vpop.permute.xlu1 %2163 }
 0x207   : > { %2096 = vmatmul.mubr.bf16.gmra.mrb[92].mxu0 %v3740_v13 }
 0x261   : > { %v3234_v14 = vpop.f32.mrb[32].mxu1 }
 0x262   : > { %v3346_v21 = vpop.f32.mrb[32].mxu0  ;;  %v3235_v5 = vpop.f32.mrb[33].mxu1 }
 0x263   : > { %v3347_v56 = vpop.f32.mrb[33].mxu0  ;;  %v3236_v40 = vadd.f32 %v3235_v5, %v3234_v14  ;;  %v3237_v54 = vpop.f32.mrb[34].mxu1 }
 0x264   : > { %v3348_v41 = vadd.f32 %v3347_v56, %v3346_v21  ;;  %v3349_v51 = vpop.f32.mrb[34].mxu0  ;;  %v3238_v25 = vpop.f32.mrb[35].mxu1 }
 0x265   : > { %v3350_v45 = vpop.f32.mrb[35].mxu0  ;;  %v3239_v55 = vadd.f32 %v3238_v25, %v3237_v54 }
 0x266   : > { %v1978_v20 = vadd.f32 %v3348_v41, %v3236_v40  ;;  %v3351_v36 = vadd.f32 %v3350_v45, %v3349_v51 }
 0x268   : > { %v2296_v57 = vmul.f32 %v2139_v10, %v1978_v20  ;;  %v1981_v39 = vadd.f32 %v3351_v36, %v3239_v55 }
 0x269   : > { %v3240_v61 = vpop.f32.mrb[36].mxu1 }
 0x26a   : > { %v4791_v60 = vadd.f32 %v4788_v33, %v2296_v57  ;;  %v2297_v2 = vmul.f32 %v2144_v62, %v1981_v39  ;;  %v3352_v26 = vpop.f32.mrb[36].mxu0  ;;  %v3241_v1 = vpop.f32.mrb[37].mxu1 }
 0x26b   : > { %v3353_v0 = vpop.f32.mrb[37].mxu0  ;;  %v3242_v50 = vadd.f32 %v3241_v1, %v3240_v61  ;;  %v3243_v30 = vpop.f32.mrb[38].mxu1 }
 0x26c   : > { %v2980_v59 = vmul.f32 -1.442695, %v4791_v60  ;;  %v4795_v46 = vadd.f32 %v4788_v33, %v2297_v2  ;;  %v3354_v63 = vadd.f32 %v3353_v0, %v3352_v26  ;;  %v3355_v3 = vpop.f32.mrb[38].mxu0  ;;  %v3244_v44 = vpop.f32.mrb[39].mxu1 }
 0x26d   : > { %v3356_v43 = vpop.f32.mrb[39].mxu0  ;;  %v3245_v23 = vadd.f32 %v3244_v44, %v3243_v30  ;;  %v2169_v26 = vpop.permute.xlu0 %2168 }
 0x26e   : > { %3741 = vpow2.f32 %v2980_v59  ;;  %v2981_v47 = vmul.f32 -1.442695, %v4795_v46  ;;  %v1986_v48 = vadd.f32 %v3354_v63, %v3242_v50  ;;  %v3357_v29 = vadd.f32 %v3356_v43, %v3355_v3  ;;  %v2174_v50 = vpop.permute.xlu1 %2173 }
 0x270   : > { %3743 = vpow2.f32 %v2981_v47  ;;  %v2298_v16 = vmul.f32 %v2149_v49, %v1986_v48  ;;  %v1989_v24 = vadd.f32 %v3357_v29, %v3245_v23 }
 0x271   : > { %v3246_v4 = vpop.f32.mrb[40].mxu1 }
 0x272   : > { %v4799_v37 = vadd.f32 %v4788_v33, %v2298_v16  ;;  %v3358_v7 = vpop.f32.mrb[40].mxu0  ;;  %v2299_v42 = vmul.f32 %v2154_v58, %v1989_v24  ;;  %v3247_v38 = vpop.f32.mrb[41].mxu1 }
 0x273   : > { %v3359_v52 = vpop.f32.mrb[41].mxu0  ;;  %v3248_v8 = vadd.f32 %v3247_v38, %v3246_v4  ;;  %v3249_v9 = vpop.f32.mrb[42].mxu1 }
 0x274   : > { %v2982_v6 = vmul.f32 -1.442695, %v4799_v37  ;;  %v3360_v22 = vadd.f32 %v3359_v52, %v3358_v7  ;;  %v3361_v28 = vpop.f32.mrb[42].mxu0  ;;  %v4803_v27 = vadd.f32 %v4788_v33, %v2299_v42  ;;  %v3250_v31 = vpop.f32.mrb[43].mxu1 }
 0x275   : > { %v3362_v32 = vpop.f32.mrb[43].mxu0  ;;  %v3251_v12 = vadd.f32 %v3250_v31, %v3249_v9 }
 0x276   : > { %3745 = vpow2.f32 %v2982_v6  ;;  %v1994_v19 = vadd.f32 %v3360_v22, %v3248_v8  ;;  %v3363_v11 = vadd.f32 %v3362_v32, %v3361_v28  ;;  %v2983_v17 = vmul.f32 -1.442695, %v4803_v27  ;;  %v2179_v28 = vpop.permute.xlu0 %2178 }
 0x278   : > { %v3742_v18 = vpop.eup %3741  ;;  %v2300_v35 = vmul.f32 %v2159_v15, %v1994_v19  ;;  %v1997_v34 = vadd.f32 %v3363_v11, %v3251_v12  ;;  %3747 = vpow2.f32 %v2983_v17  ;;  %v2184_v17 = vpop.permute.xlu1 %2183 }
 0x279   : > { %v2463_v13 = vadd.f32 1.0, %v3742_v18  ;;  %v3252_v56 = vpop.f32.mrb[44].mxu1 }
 0x27a   : > { %v3744_v14 = vpop.eup %3743  ;;  %v4807_v21 = vadd.f32 %v4788_v33, %v2300_v35  ;;  %v2301_v5 = vmul.f32 %v2164_v53, %v1997_v34  ;;  %v3364_v40 = vpop.f32.mrb[44].mxu0 }
 0x27b   : > { %3749 = vrcp.f32 %v2463_v13  ;;  %v2464_v41 = vadd.f32 1.0, %v3744_v14  ;;  %v3253_v54 = vpop.f32.mrb[45].mxu1  ;;  %v3365_v51 = vpop.f32.mrb[45].mxu0 }
 0x27c   : > { %v2984_v25 = vmul.f32 -1.442695, %v4807_v21  ;;  %v4811_v45 = vadd.f32 %v4788_v33, %v2301_v5  ;;  %v3254_v20 = vadd.f32 %v3253_v54, %v3252_v56  ;;  %v3366_v55 = vadd.f32 %v3365_v51, %v3364_v40  ;;  %v3255_v36 = vpop.f32.mrb[46].mxu1  ;;  %v3367_v10 = vpop.f32.mrb[46].mxu0 }
 0x27d   : > { %3751 = vrcp.f32 %v2464_v41  ;;  %v3256_v57 = vpop.f32.mrb[47].mxu1  ;;  %v3368_v39 = vpop.f32.mrb[47].mxu0 }
 0x27e   : > { %3753 = vpow2.f32 %v2984_v25  ;;  %v2985_v62 = vmul.f32 -1.442695, %v4811_v45  ;;  %v2002_v2 = vadd.f32 %v3366_v55, %v3254_v20  ;;  %v3257_v61 = vadd.f32 %v3256_v57, %v3255_v36 }
 0x27f   : > { %v3369_v1 = vadd.f32 %v3368_v39, %v3367_v10 }
 0x280   : > { %v3746_v0 = vpop.eup %3745  ;;  %3755 = vpow2.f32 %v2985_v62  ;;  %v2302_v59 = vmul.f32 %v2169_v26, %v2002_v2  ;;  %v2189_v2 = vpop.permute.xlu0 %2188 }
 0x281   : > { %v2465_v63 = vadd.f32 1.0, %v3746_v0  ;;  %v2005_v30 = vadd.f32 %v3369_v1, %v3257_v61  ;;  %v3258_v44 = vpop.f32.mrb[48].mxu1 }
 0x282   : > { %v4815_v3 = vadd.f32 %v4788_v33, %v2302_v59  ;;  %v3370_v43 = vpop.f32.mrb[48].mxu0  ;;  %v3748_v47 = vpop.eup %3747 }
 0x283   : > { %3757 = vrcp.f32 %v2465_v63  ;;  %v2303_v48 = vmul.f32 %v2174_v50, %v2005_v30  ;;  %v3259_v23 = vpop.f32.mrb[49].mxu1  ;;  %v3371_v49 = vpop.f32.mrb[49].mxu0  ;;  %v2466_v29 = vadd.f32 1.0, %v3748_v47 }
 0x284   : > { %v2986_v16 = vmul.f32 -1.442695, %v4815_v3  ;;  %v3260_v58 = vadd.f32 %v3259_v23, %v3258_v44  ;;  %v3372_v24 = vadd.f32 %v3371_v49, %v3370_v43  ;;  %v3261_v4 = vpop.f32.mrb[50].mxu1  ;;  %v3373_v7 = vpop.f32.mrb[50].mxu0 }
 0x285   : > { %v3750_v42 = vpop.eup %3749  ;;  %v4820_v38 = vadd.f32 %v4788_v33, %v2303_v48  ;;  %v3262_v52 = vpop.f32.mrb[51].mxu1  ;;  %3759 = vrcp.f32 %v2466_v29 }
 0x286   : > { %v3374_v6 = vpop.f32.mrb[51].mxu0  ;;  %v2010_v8 = vadd.f32 %v3372_v24, %v3260_v58  ;;  %v3263_v22 = vadd.f32 %v3262_v52, %v3261_v4  ;;  %3761 = vpow2.f32 %v2986_v16  ;;  %v2559_v12 = vmul.f32 %v3750_v42, %v4791_v60  ;;  %v2194_v50 = vpop.permute.xlu1 %2193 }
 0x287   : > { %v3752_v9 = vpop.eup %3751  ;;  %v2987_v31 = vmul.f32 -1.442695, %v4820_v38  ;;  %v3375_v32 = vadd.f32 %v3374_v6, %v3373_v7 }
 0x288   : > { %v3754_v19 = vpop.eup %3753  ;;  %v2560_v11 = vmul.f32 %v3752_v9, %v4795_v46  ;;  %v2304_v15 = vmul.f32 %v2179_v28, %v2010_v8 }
 0x289   : > { %v2467_v18 = vadd.f32 1.0, %v3754_v19  ;;  %3763 = vpow2.f32 %v2987_v31  ;;  %v2013_v35 = vadd.f32 %v3375_v32, %v3263_v22  ;;  %v3264_v14 = vpop.f32.mrb[52].mxu1 }
 0x28a   : > { %v3756_v34 = vpop.eup %3755  ;;  %v3086_v53 = vpack.c.bf16 %v2560_v11, %v2559_v12  ;;  %v4828_v13 = vadd.f32 %v4788_v33, %v2304_v15  ;;  %v3376_v5 = vpop.f32.mrb[52].mxu0 }
 0x28b   : > { %3765 = vrcp.f32 %v2467_v18  ;;  %v2468_v56 = vadd.f32 1.0, %v3756_v34  ;;  %v2305_v40 = vmul.f32 %v2184_v17, %v2013_v35  ;;  %v3265_v41 = vpop.f32.mrb[53].mxu1  ;;  %v3377_v54 = vpop.f32.mrb[53].mxu0 }
 0x28c   : > { %3087 = vst [vmem:[%s4830_s15] sm:$0xff] %v3086_v53   ;;  %v2988_v60 = vmul.f32 -1.442695, %v4828_v13  ;;  %v3266_v46 = vadd.f32 %v3265_v41, %v3264_v14  ;;  %v3378_v51 = vadd.f32 %v3377_v54, %v3376_v5  ;;  %v3267_v25 = vpop.f32.mrb[54].mxu1  ;;  %v3379_v20 = vpop.f32.mrb[54].mxu0 }
 0x28d   : > { %v3758_v55 = vpop.eup %3757  ;;  %3767 = vrcp.f32 %v2468_v56  ;;  %v4835_v36 = vadd.f32 %v4788_v33, %v2305_v40  ;;  %v3268_v10 = vpop.f32.mrb[55].mxu1 }
 0x28e   : > { %v3380_v57 = vpop.f32.mrb[55].mxu0  ;;  %3769 = vpow2.f32 %v2988_v60  ;;  %v2018_v39 = vadd.f32 %v3378_v51, %v3266_v46  ;;  %v3269_v62 = vadd.f32 %v3268_v10, %v3267_v25  ;;  %v2561_v63 = vmul.f32 %v3758_v55, %v4799_v37  ;;  %v2199_v15 = vpop.permute.xlu0 %2198 }
 0x28f   : > { %v2989_v61 = vmul.f32 -1.442695, %v4835_v36  ;;  %v3381_v26 = vadd.f32 %v3380_v57, %v3379_v20  ;;  %v3760_v1 = vpop.eup %3759  ;;  %v2204_v34 = vpop.permute.xlu1 %2203 }
 0x290   : > { %v2306_v0 = vmul.f32 %v2189_v2, %v2018_v39  ;;  %v3762_v59 = vpop.eup %3761  ;;  %v2562_v30 = vmul.f32 %v3760_v1, %v4803_v27 }
 0x291   : > { %3771 = vpow2.f32 %v2989_v61  ;;  %v2021_v44 = vadd.f32 %v3381_v26, %v3269_v62  ;;  %v2469_v43 = vadd.f32 1.0, %v3762_v59  ;;  %v3270_v48 = vpop.f32.mrb[56].mxu1 }
 0x292   : > { %v4841_v47 = vadd.f32 %v4788_v33, %v2306_v0  ;;  %v3382_v23 = vpop.f32.mrb[56].mxu0  ;;  %v3091_v29 = vpack.c.bf16 %v2562_v30, %v2561_v63  ;;  %v3271_v58 = vpop.f32.mrb[57].mxu1 }
 0x293   : > { %v3764_v49 = vpop.eup %3763  ;;  %v2307_v16 = vmul.f32 %v2194_v50, %v2021_v44  ;;  %v3383_v24 = vpop.f32.mrb[57].mxu0  ;;  %3773 = vrcp.f32 %v2469_v43  ;;  %v3272_v7 = vadd.f32 %v3271_v58, %v3270_v48 }
 0x294   : > { %v2470_v4 = vadd.f32 1.0, %v3764_v49  ;;  %v2990_v37 = vmul.f32 -1.442695, %v4841_v47  ;;  %v3273_v27 = vpop.f32.mrb[58].mxu1  ;;  %v3385_v42 = vpop.f32.mrb[58].mxu0  ;;  %3163 = vst [vmem:[%s4830_s15 + $0x8] sm:$0xff] %v3091_v29   ;;  %v3384_v8 = vadd.f32 %v3383_v24, %v3382_v23 }
 0x295   : > { %v3766_v52 = vpop.eup %3765  ;;  %v4846_v6 = vadd.f32 %v4788_v33, %v2307_v16  ;;  %v3274_v22 = vpop.f32.mrb[59].mxu1 }
 0x296   : > { %v3386_v9 = vpop.f32.mrb[59].mxu0  ;;  %3775 = vrcp.f32 %v2470_v4  ;;  %v3275_v28 = vadd.f32 %v3274_v22, %v3273_v27  ;;  %v2026_v12 = vadd.f32 %v3384_v8, %v3272_v7  ;;  %v2563_v17 = vmul.f32 %v3766_v52, %v4807_v21  ;;  %v2209_v0 = vpop.permute.xlu0 %2208 }
 0x297   : > { %v3387_v31 = vadd.f32 %v3386_v9, %v3385_v42  ;;  %v3768_v32 = vpop.eup %3767  ;;  %3777 = vpow2.f32 %v2990_v37  ;;  %v2991_v19 = vmul.f32 -1.442695, %v4846_v6  ;;  %v2214_v44 = vpop.permute.xlu1 %2213 }
 0x298   : > { %v3770_v11 = vpop.eup %3769  ;;  %v2564_v18 = vmul.f32 %v3768_v32, %v4811_v45  ;;  %v2308_v14 = vmul.f32 %v2199_v15, %v2026_v12 }
 0x299   : > { %v2029_v35 = vadd.f32 %v3387_v31, %v3275_v28  ;;  %v2471_v53 = vadd.f32 1.0, %v3770_v11  ;;  %3779 = vpow2.f32 %v2991_v19  ;;  %v3276_v40 = vpop.f32.mrb[60].mxu1 }
 0x29a   : > { %v3096_v5 = vpack.c.bf16 %v2564_v18, %v2563_v17  ;;  %v3388_v41 = vpop.f32.mrb[60].mxu0  ;;  %v4852_v60 = vadd.f32 %v4788_v33, %v2308_v14  ;;  %v3277_v46 = vpop.f32.mrb[61].mxu1 }
 0x29b   : > { %v2309_v56 = vmul.f32 %v2204_v34, %v2029_v35  ;;  %v3772_v54 = vpop.eup %3771  ;;  %3781 = vrcp.f32 %v2471_v53  ;;  %v3389_v51 = vpop.f32.mrb[61].mxu0  ;;  %v3278_v25 = vadd.f32 %v3277_v46, %v3276_v40 }
 0x29c   : > { %3164 = vst [vmem:[%s4830_s15 + $0x10] sm:$0xff] %v3096_v5   ;;  %v2472_v21 = vadd.f32 1.0, %v3772_v54  ;;  %v3390_v20 = vadd.f32 %v3389_v51, %v3388_v41  ;;  %v3279_v55 = vpop.f32.mrb[62].mxu1  ;;  %v3391_v10 = vpop.f32.mrb[62].mxu0  ;;  %v2992_v57 = vmul.f32 -1.442695, %v4852_v60 }
 0x29d   : > { %v4856_v45 = vadd.f32 %v4788_v33, %v2309_v56  ;;  %v3280_v39 = vpop.f32.mrb[63].mxu1  ;;  %v3392_v62 = vpop.f32.mrb[63].mxu0 }
 0x29e   : > { %v3774_v2 = vpop.eup %3773  ;;  %3783 = vrcp.f32 %v2472_v21  ;;  %v2034_v26 = vadd.f32 %v3390_v20, %v3278_v25  ;;  %v3281_v1 = vadd.f32 %v3280_v39, %v3279_v55  ;;  %v3393_v59 = vadd.f32 %v3392_v62, %v3391_v10  ;;  %v2219_v18 = vpop.permute.xlu0 %2218 }
 0x29f   : > { %v2993_v61 = vmul.f32 -1.442695, %v4856_v45  ;;  %3785 = vpow2.f32 %v2992_v57  ;;  %v2565_v43 = vmul.f32 %v3774_v2, %v4815_v3  ;;  %v2224_v53 = vpop.permute.xlu1 %2223 }
 0x2a0   : > { %v3776_v50 = vpop.eup %3775  ;;  %v2310_v63 = vmul.f32 %v2209_v0, %v2034_v26  ;;  %v2037_v23 = vadd.f32 %v3393_v59, %v3281_v1 }
 0x2a1   : > { %3787 = vpow2.f32 %v2993_v61  ;;  %v3778_v30 = vpop.eup %3777  ;;  %v2566_v48 = vmul.f32 %v3776_v50, %v4820_v38  ;;  %v3282_v16 = vpop.f32.mrb[64].mxu1 }
 0x2a2   : > { %v2473_v49 = vadd.f32 1.0, %v3778_v30  ;;  %v4863_v29 = vadd.f32 %v4788_v33, %v2310_v63  ;;  %v3394_v58 = vpop.f32.mrb[64].mxu0  ;;  %v2311_v37 = vmul.f32 %v2214_v44, %v2037_v23  ;;  %v3283_v7 = vpop.f32.mrb[65].mxu1 }
 0x2a3   : > { %v3780_v24 = vpop.eup %3779  ;;  %v3101_v4 = vpack.c.bf16 %v2566_v48, %v2565_v43  ;;  %v3395_v27 = vpop.f32.mrb[65].mxu0  ;;  %v3284_v3 = vadd.f32 %v3283_v7, %v3282_v16 }
 0x2a4   : > { %3789 = vrcp.f32 %v2473_v49  ;;  %v2474_v42 = vadd.f32 1.0, %v3780_v24  ;;  %v2994_v52 = vmul.f32 -1.442695, %v4863_v29  ;;  %v3285_v8 = vpop.f32.mrb[66].mxu1  ;;  %v3397_v38 = vpop.f32.mrb[66].mxu0  ;;  %v4868_v9 = vadd.f32 %v4788_v33, %v2311_v37 }
 0x2a5   : > { %v3782_v22 = vpop.eup %3781  ;;  %3165 = vst [vmem:[%s4830_s15 + $0x18] sm:$0xff] %v3101_v4   ;;  %v3396_v28 = vadd.f32 %v3395_v27, %v3394_v58  ;;  %v3286_v31 = vpop.f32.mrb[67].mxu1 }
 0x2a6   : > { %v3398_v32 = vpop.f32.mrb[67].mxu0  ;;  %3791 = vrcp.f32 %v2474_v42  ;;  %v3287_v19 = vadd.f32 %v3286_v31, %v3285_v8  ;;  %v2995_v11 = vmul.f32 -1.442695, %v4868_v9  ;;  %v2567_v14 = vmul.f32 %v3782_v22, %v4828_v13  ;;  %v2229_v30 = vpop.permute.xlu0 %2228 }
 0x2a7   : > { %v3399_v12 = vadd.f32 %v3398_v32, %v3397_v38  ;;  %3793 = vpow2.f32 %v2994_v52  ;;  %v2042_v15 = vadd.f32 %v3396_v28, %v3284_v3  ;;  %v2234_v49 = vpop.permute.xlu1 %2233 }
 0x2a8   : > { %v3784_v17 = vpop.eup %3783  ;;  %3795 = vpow2.f32 %v2995_v11 }
 0x2a9   : > { %v2045_v35 = vadd.f32 %v3399_v12, %v3287_v19  ;;  %v3786_v34 = vpop.eup %3785  ;;  %v2568_v5 = vmul.f32 %v3784_v17, %v4835_v36  ;;  %v2312_v56 = vmul.f32 %v2219_v18, %v2042_v15  ;;  %v3288_v46 = vpop.f32.mrb[68].mxu1 }
 0x2aa   : > { %v2475_v41 = vadd.f32 1.0, %v3786_v34  ;;  %v3400_v51 = vpop.f32.mrb[68].mxu0  ;;  %v3289_v55 = vpop.f32.mrb[69].mxu1 }
 0x2ab   : > { %v3788_v40 = vpop.eup %3787  ;;  %v2313_v54 = vmul.f32 %v2224_v53, %v2045_v35  ;;  %v3106_v21 = vpack.c.bf16 %v2568_v5, %v2567_v14  ;;  %v4874_v20 = vadd.f32 %v4788_v33, %v2312_v56  ;;  %v3401_v10 = vpop.f32.mrb[69].mxu0  ;;  %v3290_v36 = vadd.f32 %v3289_v55, %v3288_v46 }
 0x2ac   : > { %v2476_v25 = vadd.f32 1.0, %v3788_v40  ;;  %3797 = vrcp.f32 %v2475_v41  ;;  %v3402_v57 = vadd.f32 %v3401_v10, %v3400_v51  ;;  %v3291_v39 = vpop.f32.mrb[70].mxu1  ;;  %v3403_v62 = vpop.f32.mrb[70].mxu0 }
 0x2ad   : > { %v4877_v13 = vadd.f32 %v4788_v33, %v2313_v54  ;;  %3166 = vst [vmem:[%s4830_s15 + $0x20] sm:$0xff] %v3106_v21   ;;  %v2996_v2 = vmul.f32 -1.442695, %v4874_v20  ;;  %v3292_v61 = vpop.f32.mrb[71].mxu1  ;;  %v3404_v26 = vpop.f32.mrb[71].mxu0 }
 0x2ae   : > { %3799 = vrcp.f32 %v2476_v25  ;;  %v3790_v1 = vpop.eup %3789  ;;  %v2050_v59 = vadd.f32 %v3402_v57, %v3290_v36  ;;  %v3293_v50 = vadd.f32 %v3292_v61, %v3291_v39  ;;  %v3405_v63 = vadd.f32 %v3404_v26, %v3403_v62  ;;  %v2239_v53 = vpop.permute.xlu0 %2238 }
 0x2af   : > { %v2997_v0 = vmul.f32 -1.442695, %v4877_v13  ;;  %3801 = vpow2.f32 %v2996_v2  ;;  %v2569_v16 = vmul.f32 %v3790_v1, %v4841_v47  ;;  %v2244_v41 = vpop.permute.xlu1 %2243 }
 0x2b0   : > { %v3792_v44 = vpop.eup %3791  ;;  %v2314_v43 = vmul.f32 %v2229_v30, %v2050_v59  ;;  %v2053_v48 = vadd.f32 %v3405_v63, %v3293_v50 }
 0x2b1   : > { %3803 = vpow2.f32 %v2997_v0  ;;  %v3794_v23 = vpop.eup %3793  ;;  %v2570_v58 = vmul.f32 %v3792_v44, %v4846_v6  ;;  %v3294_v7 = vpop.f32.mrb[72].mxu1 }
 0x2b2   : > { %v2477_v24 = vadd.f32 1.0, %v3794_v23  ;;  %v4885_v4 = vadd.f32 %v4788_v33, %v2314_v43  ;;  %v2315_v37 = vmul.f32 %v2234_v49, %v2053_v48  ;;  %v3406_v27 = vpop.f32.mrb[72].mxu0  ;;  %v3796_v42 = vpop.eup %3795 }
 0x2b3   : > { %v3111_v52 = vpack.c.bf16 %v2570_v58, %v2569_v16  ;;  %v3295_v3 = vpop.f32.mrb[73].mxu1  ;;  %v3407_v8 = vpop.f32.mrb[73].mxu0  ;;  %v2478_v38 = vadd.f32 1.0, %v3796_v42 }
 0x2b4   : > { %3805 = vrcp.f32 %v2477_v24  ;;  %v2998_v22 = vmul.f32 -1.442695, %v4885_v4  ;;  %v4889_v47 = vadd.f32 %v4788_v33, %v2315_v37  ;;  %v3297_v6 = vpop.f32.mrb[74].mxu1  ;;  %v3409_v28 = vpop.f32.mrb[74].mxu0  ;;  %v3296_v31 = vadd.f32 %v3295_v3, %v3294_v7 }
 0x2b5   : > { %3167 = vst [vmem:[%s4830_s15 + $0x28] sm:$0xff] %v3111_v52   ;;  %v3408_v32 = vadd.f32 %v3407_v8, %v3406_v27  ;;  %v3298_v19 = vpop.f32.mrb[75].mxu1  ;;  %v3410_v12 = vpop.f32.mrb[75].mxu0  ;;  %3807 = vrcp.f32 %v2478_v38 }
 0x2b6   : > { %v3798_v11 = vpop.eup %3797  ;;  %v2999_v15 = vmul.f32 -1.442695, %v4889_v47  ;;  %v3299_v17 = vadd.f32 %v3298_v19, %v3297_v6  ;;  %v3411_v18 = vadd.f32 %v3410_v12, %v3409_v28  ;;  %3809 = vpow2.f32 %v2998_v22  ;;  %v2249_v48 = vpop.permute.xlu0 %2248 }
 0x2b7   : > { %v2058_v34 = vadd.f32 %v3408_v32, %v3296_v31  ;;  %v2571_v14 = vmul.f32 %v3798_v11, %v4852_v60  ;;  %v2254_v24 = vpop.permute.xlu1 %2253 }
 0x2b8   : > { %v3800_v35 = vpop.eup %3799  ;;  %3811 = vpow2.f32 %v2999_v15  ;;  %v2061_v56 = vadd.f32 %v3411_v18, %v3299_v17 }
 0x2b9   : > { %v2572_v5 = vmul.f32 %v3800_v35, %v4856_v45  ;;  %v3802_v40 = vpop.eup %3801  ;;  %v2316_v54 = vmul.f32 %v2239_v53, %v2058_v34  ;;  %v3300_v55 = vpop.f32.mrb[76].mxu1 }
 0x2ba   : > { %v2479_v21 = vadd.f32 1.0, %v3802_v40  ;;  %v2317_v25 = vmul.f32 %v2244_v41, %v2061_v56  ;;  %v3412_v10 = vpop.f32.mrb[76].mxu0  ;;  %v3301_v39 = vpop.f32.mrb[77].mxu1 }
 0x2bb   : > { %v3804_v46 = vpop.eup %3803  ;;  %v3116_v51 = vpack.c.bf16 %v2572_v5, %v2571_v14  ;;  %v4896_v57 = vadd.f32 %v4788_v33, %v2316_v54  ;;  %v3413_v60 = vpop.f32.mrb[77].mxu0  ;;  %v3302_v62 = vadd.f32 %v3301_v39, %v3300_v55 }
 0x2bc   : > { %v2480_v36 = vadd.f32 1.0, %v3804_v46  ;;  %3813 = vrcp.f32 %v2479_v21  ;;  %v4900_v45 = vadd.f32 %v4788_v33, %v2317_v25  ;;  %v3414_v2 = vadd.f32 %v3413_v60, %v3412_v10  ;;  %v3303_v61 = vpop.f32.mrb[78].mxu1  ;;  %v3415_v26 = vpop.f32.mrb[78].mxu0 }
 0x2bd   : > { %3168 = vst [vmem:[%s4830_s15 + $0x30] sm:$0xff] %v3116_v51   ;;  %v3000_v1 = vmul.f32 -1.442695, %v4896_v57  ;;  %v3304_v0 = vpop.f32.mrb[79].mxu1  ;;  %v3416_v59 = vpop.f32.mrb[79].mxu0 }
 0x2be   : > { %3815 = vrcp.f32 %v2480_v36  ;;  %v3806_v50 = vpop.eup %3805  ;;  %v3001_v63 = vmul.f32 -1.442695, %v4900_v45  ;;  %v2066_v30 = vadd.f32 %v3414_v2, %v3302_v62  ;;  %v3305_v44 = vadd.f32 %v3304_v0, %v3303_v61  ;;  %v2259_v56 = vpop.permute.xlu0 %2258 }
 0x2bf   : > { %v3417_v43 = vadd.f32 %v3416_v59, %v3415_v26  ;;  %3817 = vpow2.f32 %v3000_v1  ;;  %v3808_v23 = vpop.eup %3807  ;;  %v2573_v37 = vmul.f32 %v3806_v50, %v4863_v29  ;;  %v2264_v51 = vpop.permute.xlu1 %2263 }
 0x2c0   : > { %3819 = vpow2.f32 %v3001_v63  ;;  %v2318_v49 = vmul.f32 %v2249_v48, %v2066_v30  ;;  %v3810_v58 = vpop.eup %3809  ;;  %v2574_v7 = vmul.f32 %v3808_v23, %v4868_v9 }
 0x2c1   : > { %v2069_v16 = vadd.f32 %v3417_v43, %v3305_v44  ;;  %v2481_v42 = vadd.f32 1.0, %v3810_v58  ;;  %v3306_v8 = vpop.f32.mrb[80].mxu1 }
 0x2c2   : > { %v3812_v27 = vpop.eup %3811  ;;  %v4907_v52 = vadd.f32 %v4788_v33, %v2318_v49  ;;  %v3418_v38 = vpop.f32.mrb[80].mxu0  ;;  %v3121_v22 = vpack.c.bf16 %v2574_v7, %v2573_v37 }
 0x2c3   : > { %v2319_v3 = vmul.f32 %v2254_v24, %v2069_v16  ;;  %v2482_v6 = vadd.f32 1.0, %v3812_v27  ;;  %v3307_v28 = vpop.f32.mrb[81].mxu1  ;;  %v3419_v31 = vpop.f32.mrb[81].mxu0  ;;  %3821 = vrcp.f32 %v2481_v42 }
 0x2c4   : > { %v3002_v32 = vmul.f32 -1.442695, %v4907_v52  ;;  %v3308_v9 = vadd.f32 %v3307_v28, %v3306_v8  ;;  %v3309_v19 = vpop.f32.mrb[82].mxu1  ;;  %v3421_v12 = vpop.f32.mrb[82].mxu0  ;;  %3169 = vst [vmem:[%s4830_s15 + $0x38] sm:$0xff] %v3121_v22   ;;  %v3420_v11 = vadd.f32 %v3419_v31, %v3418_v38 }
 0x2c5   : > { %v4911_v29 = vadd.f32 %v4788_v33, %v2319_v3  ;;  %3823 = vrcp.f32 %v2482_v6  ;;  %v3310_v15 = vpop.f32.mrb[83].mxu1  ;;  %v3422_v17 = vpop.f32.mrb[83].mxu0 }
 0x2c6   : > { %v3814_v18 = vpop.eup %3813  ;;  %3825 = vpow2.f32 %v3002_v32  ;;  %v3311_v34 = vadd.f32 %v3310_v15, %v3309_v19  ;;  %v3423_v53 = vadd.f32 %v3422_v17, %v3421_v12  ;;  %v2074_v5 = vadd.f32 %v3420_v11, %v3308_v9  ;;  %v2269_v58 = vpop.permute.xlu0 %2268 }
 0x2c7   : > { %v3003_v35 = vmul.f32 -1.442695, %v4911_v29  ;;  %v2575_v40 = vmul.f32 %v3814_v18, %v4874_v20  ;;  %v2274_v3 = vpop.permute.xlu1 %2273 }
 0x2c8   : > { %v3816_v14 = vpop.eup %3815  ;;  %v2077_v54 = vadd.f32 %v3423_v53, %v3311_v34  ;;  %v2320_v21 = vmul.f32 %v2259_v56, %v2074_v5 }
 0x2c9   : > { %v2576_v41 = vmul.f32 %v3816_v14, %v4877_v13  ;;  %3827 = vpow2.f32 %v3003_v35  ;;  %v3818_v46 = vpop.eup %3817  ;;  %v3312_v39 = vpop.f32.mrb[84].mxu1 }
 0x2ca   : > { %v3820_v25 = vpop.eup %3819  ;;  %v2483_v10 = vadd.f32 1.0, %v3818_v46  ;;  %v2321_v36 = vmul.f32 %v2264_v51, %v2077_v54  ;;  %v3424_v60 = vpop.f32.mrb[84].mxu0  ;;  %v4918_v2 = vadd.f32 %v4788_v33, %v2320_v21 }
 0x2cb   : > { %v3126_v55 = vpack.c.bf16 %v2576_v41, %v2575_v40  ;;  %v2484_v62 = vadd.f32 1.0, %v3820_v25  ;;  %v3313_v61 = vpop.f32.mrb[85].mxu1  ;;  %v3425_v20 = vpop.f32.mrb[85].mxu0 }
 0x2cc   : > { %3829 = vrcp.f32 %v2483_v10  ;;  %v4922_v13 = vadd.f32 %v4788_v33, %v2321_v36  ;;  %v3314_v26 = vadd.f32 %v3313_v61, %v3312_v39  ;;  %v3426_v1 = vadd.f32 %v3425_v20, %v3424_v60  ;;  %v3315_v0 = vpop.f32.mrb[86].mxu1  ;;  %v3427_v59 = vpop.f32.mrb[86].mxu0 }
 0x2cd   : > { %3170 = vst [vmem:[%s4830_s15 + $0x40] sm:$0xff] %v3126_v55   ;;  %3831 = vrcp.f32 %v2484_v62  ;;  %v3004_v50 = vmul.f32 -1.442695, %v4918_v2  ;;  %v3316_v63 = vpop.f32.mrb[87].mxu1  ;;  %v3428_v30 = vpop.f32.mrb[87].mxu0 }
 0x2ce   : > { %v3822_v44 = vpop.eup %3821  ;;  %v3005_v43 = vmul.f32 -1.442695, %v4922_v13  ;;  %v2082_v48 = vadd.f32 %v3426_v1, %v3314_v26  ;;  %v3317_v23 = vadd.f32 %v3316_v63, %v3315_v0  ;;  %v3429_v49 = vadd.f32 %v3428_v30, %v3427_v59  ;;  %v2279_v41 = vpop.permute.xlu0 %2278 }
 0x2cf   : > { %v3824_v16 = vpop.eup %3823  ;;  %v2577_v24 = vmul.f32 %v3822_v44, %v4885_v4  ;;  %3833 = vpow2.f32 %v3004_v50  ;;  %v2284_v55 = vpop.permute.xlu1 %2283 }
 0x2d0   : > { %v3826_v37 = vpop.eup %3825  ;;  %v2578_v7 = vmul.f32 %v3824_v16, %v4889_v47  ;;  %3835 = vpow2.f32 %v3005_v43  ;;  %v2322_v27 = vmul.f32 %v2269_v58, %v2082_v48  ;;  %v2085_v42 = vadd.f32 %v3429_v49, %v3317_v23 }
 0x2d1   : > { %v2485_v8 = vadd.f32 1.0, %v3826_v37  ;;  %v3318_v31 = vpop.f32.mrb[88].mxu1 }
 0x2d2   : > { %v3131_v22 = vpack.c.bf16 %v2578_v7, %v2577_v24  ;;  %v4929_v6 = vadd.f32 %v4788_v33, %v2322_v27  ;;  %v2323_v28 = vmul.f32 %v2274_v3, %v2085_v42  ;;  %v3430_v32 = vpop.f32.mrb[88].mxu0  ;;  %v3319_v9 = vpop.f32.mrb[89].mxu1 }
 0x2d3   : > { %v3828_v38 = vpop.eup %3827  ;;  %3837 = vrcp.f32 %v2485_v8  ;;  %v3431_v19 = vpop.f32.mrb[89].mxu0  ;;  %v3320_v11 = vadd.f32 %v3319_v9, %v3318_v31 }
 0x2d4   : > { %v2486_v4 = vadd.f32 1.0, %v3828_v38  ;;  %3171 = vst [vmem:[%s4830_s15 + $0x48] sm:$0xff] %v3131_v22   ;;  %v3006_v47 = vmul.f32 -1.442695, %v4929_v6  ;;  %v4934_v12 = vadd.f32 %v4788_v33, %v2323_v28  ;;  %v3432_v15 = vadd.f32 %v3431_v19, %v3430_v32  ;;  %v3321_v17 = vpop.f32.mrb[90].mxu1  ;;  %v3433_v18 = vpop.f32.mrb[90].mxu0 }
 0x2d5   : > { %v3322_v35 = vpop.f32.mrb[91].mxu1  ;;  %v3434_v34 = vpop.f32.mrb[91].mxu0  ;;  %v3869_v32 = vld [vmem:[%s5015_s3] ss:$0 sm:$0xff] }
 0x2d6   : > { %3839 = vrcp.f32 %v2486_v4  ;;  %v3830_v53 = vpop.eup %3829  ;;  %v3007_v14 = vmul.f32 -1.442695, %v4934_v12  ;;  %v2090_v5 = vadd.f32 %v3432_v15, %v3320_v11  ;;  %v3323_v56 = vadd.f32 %v3322_v35, %v3321_v17  ;;  %v2289_v24 = vpop.permute.xlu0 %2288 }
 0x2d7   : > { %3841 = vpow2.f32 %v3006_v47  ;;  %v3832_v40 = vpop.eup %3831  ;;  %v3435_v54 = vadd.f32 %v3434_v34, %v3433_v18  ;;  %v2579_v46 = vmul.f32 %v3830_v53, %v4896_v57  ;;  %v2294_v28 = vpop.permute.xlu1 %2293 }
 0x2d8   : > { %v2580_v51 = vmul.f32 %v3832_v40, %v4900_v45  ;;  %3843 = vpow2.f32 %v3007_v14  ;;  %v2324_v21 = vmul.f32 %v2279_v41, %v2090_v5 }
 0x2d9   : > { %v3834_v25 = vpop.eup %3833  ;;  %v2093_v10 = vadd.f32 %v3435_v54, %v3323_v56  ;;  %v3324_v61 = vpop.f32.mrb[92].mxu1 }
 0x2da   : > { %v3836_v36 = vpop.eup %3835  ;;  %v3136_v39 = vpack.c.bf16 %v2580_v51, %v2579_v46  ;;  %v2487_v60 = vadd.f32 1.0, %v3834_v25  ;;  %v4940_v62 = vadd.f32 %v4788_v33, %v2324_v21  ;;  %v3436_v20 = vpop.f32.mrb[92].mxu0 }
 0x2db   : > { %v2488_v26 = vadd.f32 1.0, %v3836_v36  ;;  %v2325_v1 = vmul.f32 %v2284_v55, %v2093_v10  ;;  %v3325_v0 = vpop.f32.mrb[93].mxu1  ;;  %v3437_v57 = vpop.f32.mrb[93].mxu0 }
 0x2dc   : > { %3172 = vst [vmem:[%s4830_s15 + $0x50] sm:$0xff] %v3136_v39   ;;  %3845 = vrcp.f32 %v2487_v60  ;;  %v3008_v45 = vmul.f32 -1.442695, %v4940_v62  ;;  %v3326_v59 = vadd.f32 %v3325_v0, %v3324_v61  ;;  %v3438_v50 = vadd.f32 %v3437_v57, %v3436_v20  ;;  %v3327_v63 = vpop.f32.mrb[94].mxu1  ;;  %v3439_v30 = vpop.f32.mrb[94].mxu0 }
 0x2dd   : > { %v3838_v44 = vpop.eup %3837  ;;  %3847 = vrcp.f32 %v2488_v26  ;;  %v2364_v43 = vadd.f32 %v4788_v33, %v2325_v1  ;;  %v3328_v48 = vpop.f32.mrb[95].mxu1 }
 0x2de   : > { %v3440_v23 = vpop.f32.mrb[95].mxu0  ;;  %3849 = vpow2.f32 %v3008_v45  ;;  %v2098_v49 = vadd.f32 %v3438_v50, %v3326_v59  ;;  %v3329_v16 = vadd.f32 %v3328_v48, %v3327_v63  ;;  %v2581_v42 = vmul.f32 %v3838_v44, %v4907_v52 }
 0x2df   : > { %v3009_v37 = vmul.f32 -1.442695, %v2364_v43  ;;  %v3441_v7 = vadd.f32 %v3440_v23, %v3439_v30 }
 0x2e0   : > { %v3840_v58 = vpop.eup %3839  ;;  %v2326_v8 = vmul.f32 %v2289_v24, %v2098_v49 }
 0x2e1   : > { %v3842_v27 = vpop.eup %3841  ;;  %v2582_v3 = vmul.f32 %v3840_v58, %v4911_v29  ;;  %3851 = vpow2.f32 %v3009_v37  ;;  %v2101_v22 = vadd.f32 %v3441_v7, %v3329_v16 }
 0x2e2   : > { %v2489_v38 = vadd.f32 1.0, %v3842_v27  ;;  %v3844_v33 = vpop.eup %3843  ;;  %v2365_v4 = vadd.f32 %v3869_v32, %v2326_v8 }
 0x2e3   : > { %v3141_v31 = vpack.c.bf16 %v2582_v3, %v2581_v42  ;;  %v2490_v9 = vadd.f32 1.0, %v3844_v33  ;;  %v2327_v19 = vmul.f32 %v2294_v28, %v2101_v22 }
 0x2e4   : > { %3853 = vrcp.f32 %v2489_v38  ;;  %v3010_v52 = vmul.f32 -1.442695, %v2365_v4 }
 0x2e5   : > { %3173 = vst [vmem:[%s4830_s15 + $0x58] sm:$0xff] %v3141_v31   ;;  %3855 = vrcp.f32 %v2490_v9  ;;  %v2366_v29 = vadd.f32 %v3869_v32, %v2327_v19 }
 0x2e6   : > { %v3846_v47 = vpop.eup %3845  ;;  %3857 = vpow2.f32 %v3010_v52 }
 0x2e7   : > { %v3848_v11 = vpop.eup %3847  ;;  %v3011_v15 = vmul.f32 -1.442695, %v2366_v29  ;;  %v2583_v18 = vmul.f32 %v3846_v47, %v4918_v2 }
 0x2e8   : > { %v3850_v17 = vpop.eup %3849  ;;  %v2584_v35 = vmul.f32 %v3848_v11, %v4922_v13 }
 0x2e9   : > { %v2491_v34 = vadd.f32 1.0, %v3850_v17  ;;  %3859 = vpow2.f32 %v3011_v15 }
 0x2ea   : > { %v3146_v53 = vpack.c.bf16 %v2584_v35, %v2583_v18 }
 0x2eb   : > { %v3852_v14 = vpop.eup %3851  ;;  %3861 = vrcp.f32 %v2491_v34 }
 0x2ec   : > { %3174 = vst [vmem:[%s4830_s15 + $0x60] sm:$0xff] %v3146_v53   ;;  %v2492_v5 = vadd.f32 1.0, %v3852_v14 }
 0x2ee   : > { %v3854_v56 = vpop.eup %3853  ;;  %3863 = vrcp.f32 %v2492_v5 }
 0x2ef   : > { %v3856_v40 = vpop.eup %3855  ;;  %v2585_v54 = vmul.f32 %v3854_v56, %v4929_v6 }
 0x2f0   : > { %v3858_v41 = vpop.eup %3857  ;;  %v2586_v2 = vmul.f32 %v3856_v40, %v4934_v12 }
 0x2f1   : > { %v2493_v13 = vadd.f32 1.0, %v3858_v41 }
 0x2f2   : > { %v3151_v46 = vpack.c.bf16 %v2586_v2, %v2585_v54 }
 0x2f3   : > { %v3860_v51 = vpop.eup %3859  ;;  %3865 = vrcp.f32 %v2493_v13 }
 0x2f4   : > { %3175 = vst [vmem:[%s4830_s15 + $0x68] sm:$0xff] %v3151_v46   ;;  %v2494_v21 = vadd.f32 1.0, %v3860_v51 }
 0x2f5   : > { %v3862_v25 = vpop.eup %3861 }
 0x2f6   : > { %3867 = vrcp.f32 %v2494_v21  ;;  %v2587_v10 = vmul.f32 %v3862_v25, %v4940_v62 }
 0x2f8   : > { %v3864_v55 = vpop.eup %3863 }
 0x2f9   : > { %v2588_v36 = vmul.f32 %v3864_v55, %v2364_v43 }
 0x2fb   : > { %v3156_v6 = vpack.c.bf16 %v2588_v36, %v2587_v10 }
 0x2fd   : > { %3176 = vst [vmem:[%s4830_s15 + $0x70] sm:$0xff] %v3156_v6   ;;  %v3866_v39 = vpop.eup %3865 }
 0x2fe   : > { %v2589_v60 = vmul.f32 %v3866_v39, %v2365_v4 }
 0x300   : > { %v3868_v12 = vpop.eup %3867 }
 0x301   : > { %v2590_v61 = vmul.f32 %v3868_v12, %v2366_v29 }
 0x303   : > { %v3161_v62 = vpack.c.bf16 %v2590_v61, %v2589_v60 }
 0x305   : > { %3177 = vst [vmem:[%s4830_s15 + $0x78] sm:$0xff] %v3161_v62  }
 0x306   : > { %3939 = shalt.err (!%p3936_p11)
}
 0x307   : > { %s3940_s28 = scalar_lea.hbm %s4964_s18, 2048  ;;  %s3944_s15 = scalar_lea.hbm %s5018_s6, 4096 }
 0x308   : > { %p3941_p13 = scmp.ne.s32.totalorder %s4964_s18, %s3940_s28  ;;  %p3945_p6 = scmp.lt.u32.totalorder %s4964_s18, %s5018_s6 }
 0x309   : > { %p3946_p9 = scmp.lt.u32.totalorder %s3944_s15, %s3940_s28  ;;  %p3948_p10 = scmp.lt.u32.totalorder %s3940_s28, %s4964_s18 }
 0x30a   : > { %p3942_p5 = pnand %p3941_p13, %p5094_p1 }
 0x30b   : > { %p3947_p12 = por %p3946_p9, %p3945_p6 }
 0x30c   : > { %p3943_p0 = pneg %p3942_p5 }
 0x30d   : > { %p3949_p2 = por %p3948_p10, %p3947_p12 }
 0x30f   : > { %p3950_p3 = pnand %p3949_p2, %p3943_p0 }
 0x311   : > { %3953 = shalt.err (!%p3950_p3)
}
 0x312   : > { %s4004_s14 = smov 64   ;;  %s4005_s29 = smov 4  }
 0x313   : > { %3546 = dma.vmem_to_hbm [thread:$0]  (%p5094_p1), %s4966_s9, 2048, %s4964_s18, %s4971_s19, %s4004_s14, %s4004_s14, %s4005_s29  }
 0x314 PF: > { %p3563_p4 = scmp.ge.s32.totalorder %s3996_s24, 2  ;;  %s2780_s16 = sand.u32 1, %s3984_s21  }
 0x315   : > { %p5095_p7 = scmp.ne.s32.totalorder %s5032_s8, 0  ;;  %s2781_s25 = scalar_lea.sflag [#allocation4], %s2780_s16 }
 0x317   : > { %p3556_p8 = pnand %p3563_p4, %p5095_p7 }
 0x319   : > { %3979 = dma.done.wait (!%p3556_p8), %s2781_s25, 2048  }
 0x31a   : > { %3981 = vsyncadd (!%p3556_p8), %s2781_s25, 4294965248  ;;  %p18_p11 = scmp.ge.s32.totalorder %s4066_s27, 4   ;;  %s5096_s21 = smov %s3988_s22 }
 0x31b   : > { %s5097_s22 = smov %s3992_s23  ;;  %s5098_s23 = smov %s4077_s30 }
 0x31c   : > { %s5099_s24 = smov %s4066_s27  ;;  %20 = sbr.rel (!%p18_p11) target bundleno = 5 (0x5), region = 91 }
 0x323   :  { %2786 = vsyncpa [#allocation3], 1 }
 0x324   :  { %2788 = vsyncpa [#allocation3 + $0x1], 1 }
 0x325   :  { %2789 = vsyncpa [#allocation6], 1 }
 0x326   :  { %2790 = vsyncpa [#allocation4], 1 }
 0x327   :  { %2792 = vsyncpa [#allocation4 + $0x1], 1 }

</bundles_post_ra>
